<compile_context>
chip_gen: v5e
topology: v5e:2x2
jax: 0.10.0
libtpu: 0.0.40
codegen_flags: <defaults>
</compile_context>

<pallas_src>
import functools
import math

import jax
import jax.numpy as jnp
from jax.experimental import pallas as pl
from jax.experimental.pallas import tpu as pltpu

PI = 3.1415926
LN_EPS = 1e-5

# Generation-safe VMEM ceilings: v7x has only 64 MiB physical VMEM; v5e/v6e
# default scoped limits are 16 / 32 MiB.  48 MiB is explicit headroom on all.
_VMEM_LIMIT_CAP = 48 * 1024 * 1024
_VMEM_LIMIT_FLOOR = 16 * 1024 * 1024
_VMEM_BLOCK_BUDGET = 40 * 1024 * 1024


# ----------------------------- Pallas kernel ------------------------------- #

def _context_pooling_kernel(feats_ref,
                            w1_ref, b1_ref, g1_ref, be1_ref,
                            w2_ref, b2_ref, g2_ref, be2_ref,
                            w3_ref, b3_ref, g3_ref, be3_ref,
                            ndist_ref,
                            out_ref, *, seq_len, in_dim):
    S, D = seq_len, in_dim
    Bb = feats_ref.shape[0]
    N = Bb * S

    x3 = feats_ref[...]                       # (Bb, S, D)
    x = x3.reshape(N, D)                      # batch folded into sublanes

    # Per-item boundary masks (first / last sequence position of each item).
    row = jax.lax.broadcasted_iota(jnp.int32, (N, 1), 0)
    pos = jax.lax.rem(row, S)
    first_row = pos == 0
    last_row = pos == S - 1

    def conv_ln(h, w_ref, b_ref, g_ref, be_ref):
        # Conv1d(k=3, stride=1, padding=1) as ONE fused matmul:
        #   [x(t-1) | x(t) | x(t+1)] @ W_packed, rolled shifts masked at the
        #   per-item boundaries (zero padding; no cross-item leakage).
        h_m1 = jnp.where(first_row, 0.0, pltpu.roll(h, shift=1, axis=0))
        h_p1 = jnp.where(last_row, 0.0, pltpu.roll(h, shift=N - 1, axis=0))
        # Lane concat at Cin / 2*Cin offsets keeps K = 3*Cin as a single MXU
        # pass; a scratch-based assembly would need the same lane shuffles.
        hc = jnp.concatenate([h_m1, h, h_p1], axis=-1)          # (N, 3*Cin)
        y = jnp.dot(hc, w_ref[...], preferred_element_type=jnp.float32)
        y = y + b_ref[...]                                      # (1, Cout) bcast

        # PyTorch LayerNorm((Cout, S)): normalize over all Cout*S per item.
        # Single-pass moments: var = E[x^2] - mu^2 (one reduction sweep).
        cout = y.shape[-1]
        y3 = y.reshape(Bb, S, cout)
        mu = jnp.mean(y3, axis=(1, 2), keepdims=True)
        ex2 = jnp.mean(y3 * y3, axis=(1, 2), keepdims=True)
        var = ex2 - mu * mu
        y3 = (y3 - mu) * jax.lax.rsqrt(var + LN_EPS)
        y3 = y3 * g_ref[...][None] + be_ref[...][None]          # affine in (S,C)
        # LeakyReLU(True) -> negative_slope=1.0 -> identity (kept on purpose).
        return y3.reshape(N, cout)

    h = conv_ln(x, w1_ref, b1_ref, g1_ref, be1_ref)
    h = conv_ln(h, w2_ref, b2_ref, g2_ref, be2_ref)
    h = conv_ln(h, w3_ref, b3_ref, g3_ref, be3_ref)             # (N, 2)

    # Joint softmax over the sequence axis for both score columns at once;
    # one exact divide on the tiny (Bb, 1, 2) denominator, then a multiply.
    h3 = h.reshape(Bb, S, 2)
    m = jnp.max(h3, axis=1, keepdims=True)
    e = jnp.exp(h3 - m)
    p = e * (1.0 / jnp.sum(e, axis=1, keepdims=True))           # (Bb, S, 2)
    s = p[:, :, 0:1]                                            # (Bb, S, 1)
    w = p[:, :, 1:2]                                            # (Bb, S, 1)

    # _local_normal for all centers at once.  The (2*pi)^-0.5 / std prefactor
    # is constant over j and the exp peaks at exactly 1 at j == i, so
    # g / max(g, axis=1) reduces to the bare exponential.  -(j - i)^2 is
    # precomputed in the wrapper and stays VMEM-resident (constant index map).
    std = 0.1 * S * s                                           # (Bb, S, 1)
    inv_den = 1.0 / (1e-5 + 2.0 * std * std)                    # (Bb, S, 1)
    g = jnp.exp(ndist_ref[...][None] * inv_den)                 # (Bb, S, S)

    wx = w * x3                                                 # (Bb, S, D)
    if S <= 64:
        # Per-item (S,S)@(S,D) matmuls would be <1%-filled MXU tiles that
        # serialize over Bb, so do the weighted sums on the VPU and assemble
        # the lane-dense (Bb, S*D) output slab directly by lane concatenation.
        cols = [jnp.sum(g[:, i, :, None] * wx, axis=1) for i in range(S)]
        out_flat = jnp.concatenate(cols, axis=-1)               # (Bb, S*D)
    else:
        # MXU path: per-item tiles are reasonably filled at large S.
        # TODO(synk): for S >= ~1.4k (v7x) / ~2k (v5e/v6e), row-tile this
        # Gaussian stage over a second "arbitrary" grid axis (stash softmax /
        # w*x in VMEM scratch at row-tile 0, emit (Bb, Ti*D) output blocks) so
        # the (Bb, S, S) slab never has to fit VMEM.
        out3 = jnp.einsum('bij,bjd->bid', g, wx,
                          preferred_element_type=jnp.float32)
        out_flat = out3.reshape(Bb, S * D)

    out_ref[...] = out_flat[None]                               # (1, Bb, S*D)


# ------------------------------ wrapper ------------------------------------ #

def pack_params(params):
    """Repack PyTorch-layout parameters into kernel layout.  Call ONCE."""
    (W1, b1, G1, Be1, W2, b2, G2, Be2, W3, b3, G3, Be3) = params
    S = G1.shape[1]

    def pack_w(W):
        # Conv1d weight (Cout, Cin, 3) -> (3*Cin, Cout), row index = k*Cin + ci,
        # matching the [x(t-1) | x(t) | x(t+1)] lane concatenation in the kernel.
        cout, cin, k = W.shape
        return jnp.transpose(W, (2, 1, 0)).reshape(k * cin, cout)

    # Hoisted Gaussian distance table: -(j - i)^2, computed once, VMEM-resident.
    idx = jnp.arange(S, dtype=jnp.float32)
    neg_dist2 = -((idx[None, :] - idx[:, None]) ** 2)           # (S, S)

    return (pack_w(W1), b1.reshape(1, -1), G1.T, Be1.T,
            pack_w(W2), b2.reshape(1, -1), G2.T, Be2.T,
            pack_w(W3), b3.reshape(1, -1), G3.T, Be3.T,
            neg_dist2)


def _vmem_block_bytes(Bb, S, D, param_bytes):
    """Rough per-step VMEM working set (double-buffered I/O + live temps)."""
    n = Bb * S
    io = 2 * 2 * Bb * S * D * 4                 # in + out blocks, 2 buffers each
    acts = n * (3 * 2 * D + 2 * 2 * D) * 4      # hc + two live activations
    gauss = Bb * S * S * 4 + Bb * S * D * 4     # g slab + w*x
    return io + acts + gauss + param_bytes + S * S * 4


def _default_block_b(B, S, D, param_bytes):
    # Want >= 2 grid steps when B allows it (pipelined DMAs + v7x 2-TC megacore
    # sharding of the "parallel" axis), then grow Bb toward Bb*S >= 256 MXU
    # rows while staying under the VMEM budget.
    best = 1
    for bb in range(1, max(1, B // 2) + 1):
        if B % bb:
            continue
        if _vmem_block_bytes(bb, S, D, param_bytes) > _VMEM_BLOCK_BUDGET:
            break
        best = bb
        if bb * S >= 256:
            break
    return best


def context_pooling_pallas(feats, packed_params, *, block_b=None):
    B, S, D = feats.shape
    param_bytes = sum(int(a.size) * a.dtype.itemsize for a in packed_params)
    Bb = _default_block_b(B, S, D, param_bytes) if block_b is None else block_b
    assert B % Bb == 0, (B, Bb)
    nb = B // Bb

    def full_spec(a):
        nd = a.ndim
        return pl.BlockSpec(a.shape, lambda b, _nd=nd: (0,) * _nd)

    # Input block (Bb, S, D): the HBM->VMEM DMA is already one contiguous slab
    # (full S, D extents), so flattening it to (Bb, S*D) would only trade the
    # masked vld for an equivalent in-kernel lane<->sublane relayout.
    in_specs = [pl.BlockSpec((Bb, S, D), lambda b: (b, 0, 0))]
    in_specs += [full_spec(a) for a in packed_params]
    # Lane-dense output: (nb, Bb, S*D) array with (1, Bb, S*D) blocks (last two
    # block dims equal the full array dims) -> unmasked vst over S*D lanes.
    out_spec = pl.BlockSpec((1, Bb, S * D), lambda b: (b, 0, 0))

    vmem_limit = int(min(_VMEM_LIMIT_CAP,
                         max(_VMEM_LIMIT_FLOOR,
                             2 * _vmem_block_bytes(Bb, S, D, param_bytes))))

    conv_flops = 2 * B * S * (3 * D * 2 * D + 3 * 2 * D * 2 * D + 3 * 2 * D * 2)
    cost = pl.CostEstimate(
        flops=int(conv_flops + 2 * B * S * S * D),
        transcendentals=int(B * S * (S + 2)),
        bytes_accessed=int(2 * B * S * D * 4 + param_bytes))

    kernel = functools.partial(_context_pooling_kernel, seq_len=S, in_dim=D)

    out = pl.pallas_call(
        kernel,
        out_shape=jax.ShapeDtypeStruct((nb, Bb, S * D), jnp.float32),
        grid=(nb,),
        in_specs=in_specs,
        out_specs=out_spec,
        compiler_params=pltpu.CompilerParams(
            dimension_semantics=("parallel",),
            vmem_limit_bytes=vmem_limit),
        cost_estimate=cost,
    )(feats, *packed_params)
    return out.reshape(B, S, D)


# -------------------------- plain-JAX reference ----------------------------- #

def ref_context_pooling(feats, params):
    (W1, b1, G1, Be1, W2, b2, G2, Be2, W3, b3, G3, Be3) = params
    B, S, D = feats.shape
    x = jnp.transpose(feats, (0, 2, 1))                   # (B, C, L)

    def conv(x, W, b):
        y = jax.lax.conv_general_dilated(
            x, W, window_strides=(1,), padding=((1, 1),),
            dimension_numbers=("NCH", "OIH", "NCH"))
        return y + b[None, :, None]

    def ln(x, g, be):
        mu = x.mean(axis=(1, 2), keepdims=True)
        var = ((x - mu) ** 2).mean(axis=(1, 2), keepdims=True)
        return (x - mu) / jnp.sqrt(var + LN_EPS) * g[None] + be[None]

    h = ln(conv(x, W1, b1), G1, Be1)
    h = ln(conv(h, W2, b2), G2, Be2)
    h = ln(conv(h, W3, b3), G3, Be3)                      # (B, 2, S)

    s = jax.nn.softmax(h[:, 0, :], axis=1)
    w = jax.nn.softmax(h[:, 1, :], axis=1)
    place = jnp.arange(S, dtype=jnp.float32)
    outs = []
    for i in range(S):
        std = (0.1 * S * s[:, i])[:, None]
        ret = ((2 * PI) ** -0.5) * (1.0 / std) * jnp.exp(
            -((place[None, :] - i) ** 2) / (1e-5 + 2.0 * std ** 2))
        ret = ret / jnp.max(ret, axis=1, keepdims=True)
        w_ = (ret * w)[:, :, None]
        outs.append(jnp.sum(w_ * feats, axis=1, keepdims=True))
    return jnp.concatenate(outs, axis=1)


# ---------------------------------- main ------------------------------------ #

if __name__ == "__main__":
    B, S, D = 2, 8, 32        # batch, seq_len, in_dim
    key = jax.random.PRNGKey(0)
    ks = jax.random.split(key, 13)

    feats = jax.random.normal(ks[0], (B, S, D), dtype=jnp.float32)

    def conv_params(kw, kb, cout, cin):
        bound = 1.0 / math.sqrt(cin * 3)
        W = jax.random.uniform(kw, (cout, cin, 3), minval=-bound, maxval=bound,
                               dtype=jnp.float32)
        b = jax.random.uniform(kb, (cout,), minval=-bound, maxval=bound,
                               dtype=jnp.float32)
        return W, b

    W1, b1 = conv_params(ks[1], ks[2], 2 * D, D)
    W2, b2 = conv_params(ks[3], ks[4], 2 * D, 2 * D)
    W3, b3 = conv_params(ks[5], ks[6], 2, 2 * D)
    G1 = 1.0 + 0.1 * jax.random.normal(ks[7], (2 * D, S), jnp.float32)
    Be1 = 0.1 * jax.random.normal(ks[8], (2 * D, S), jnp.float32)
    G2 = 1.0 + 0.1 * jax.random.normal(ks[9], (2 * D, S), jnp.float32)
    Be2 = 0.1 * jax.random.normal(ks[10], (2 * D, S), jnp.float32)
    G3 = 1.0 + 0.1 * jax.random.normal(ks[11], (2, S), jnp.float32)
    Be3 = 0.1 * jax.random.normal(ks[12], (2, S), jnp.float32)

    params = (W1, b1, G1, Be1, W2, b2, G2, Be2, W3, b3, G3, Be3)

    # Repack once (hoisted out of the forward call); includes -(j-i)^2 table.
    packed = jax.block_until_ready(pack_params(params))

    out = context_pooling_pallas(feats, packed)
    out = jax.block_until_ready(out)

    ref = ref_context_pooling(feats, params)
    assert out.shape == (B, S, D), out.shape
    err = float(jnp.max(jnp.abs(out - ref)))
    assert jnp.allclose(out, ref, rtol=1e-4, atol=1e-4), err
    print("KERNEL_OK")
</pallas_src>

<mosaic_0001>
module attributes {stable_mosaic.version = 11 : i64} {
  func.func @_context_pooling_kernel(%arg0: i32, %arg1: memref<1x8x32xf32, #tpu.memory_space<vmem>>, %arg2: memref<96x64xf32, #tpu.memory_space<vmem>>, %arg3: memref<1x64xf32, #tpu.memory_space<vmem>>, %arg4: memref<8x64xf32, #tpu.memory_space<vmem>>, %arg5: memref<8x64xf32, #tpu.memory_space<vmem>>, %arg6: memref<192x64xf32, #tpu.memory_space<vmem>>, %arg7: memref<1x64xf32, #tpu.memory_space<vmem>>, %arg8: memref<8x64xf32, #tpu.memory_space<vmem>>, %arg9: memref<8x64xf32, #tpu.memory_space<vmem>>, %arg10: memref<192x2xf32, #tpu.memory_space<vmem>>, %arg11: memref<1x2xf32, #tpu.memory_space<vmem>>, %arg12: memref<8x2xf32, #tpu.memory_space<vmem>>, %arg13: memref<8x2xf32, #tpu.memory_space<vmem>>, %arg14: memref<8x8xf32, #tpu.memory_space<vmem>>, %arg15: memref<1x1x256xf32, #tpu.memory_space<vmem>>) attributes {dimension_semantics = [#tpu.dimension_semantics<parallel>], iteration_bounds = array<i64: 2>, scalar_prefetch = 0 : i64, scratch_operands = 0 : i64, tpu.core_type = #tpu.core_type<tc>, window_params = [{transform_indices = @transform_0, window_bounds = array<i64: 1, 8, 32>}, {pipeline_mode = #tpu.pipeline_mode<synchronous>, transform_indices = @transform_1, window_bounds = array<i64: 96, 64>}, {pipeline_mode = #tpu.pipeline_mode<synchronous>, transform_indices = @transform_2, window_bounds = array<i64: 1, 64>}, {pipeline_mode = #tpu.pipeline_mode<synchronous>, transform_indices = @transform_3, window_bounds = array<i64: 8, 64>}, {pipeline_mode = #tpu.pipeline_mode<synchronous>, transform_indices = @transform_4, window_bounds = array<i64: 8, 64>}, {pipeline_mode = #tpu.pipeline_mode<synchronous>, transform_indices = @transform_5, window_bounds = array<i64: 192, 64>}, {pipeline_mode = #tpu.pipeline_mode<synchronous>, transform_indices = @transform_6, window_bounds = array<i64: 1, 64>}, {pipeline_mode = #tpu.pipeline_mode<synchronous>, transform_indices = @transform_7, window_bounds = array<i64: 8, 64>}, {pipeline_mode = #tpu.pipeline_mode<synchronous>, transform_indices = @transform_8, window_bounds = array<i64: 8, 64>}, {pipeline_mode = #tpu.pipeline_mode<synchronous>, transform_indices = @transform_9, window_bounds = array<i64: 192, 2>}, {pipeline_mode = #tpu.pipeline_mode<synchronous>, transform_indices = @transform_10, window_bounds = array<i64: 1, 2>}, {pipeline_mode = #tpu.pipeline_mode<synchronous>, transform_indices = @transform_11, window_bounds = array<i64: 8, 2>}, {pipeline_mode = #tpu.pipeline_mode<synchronous>, transform_indices = @transform_12, window_bounds = array<i64: 8, 2>}, {pipeline_mode = #tpu.pipeline_mode<synchronous>, transform_indices = @transform_13, window_bounds = array<i64: 8, 8>}, {transform_indices = @transform_14, window_bounds = array<i64: 1, 1, 256>}]} {
    %c0 = arith.constant 0 : index
    %c0_0 = arith.constant 0 : index
    %c0_1 = arith.constant 0 : index
    %0 = vector.load %arg1[%c0, %c0_0, %c0_1] : memref<1x8x32xf32, #tpu.memory_space<vmem>>, vector<1x8x32xf32>
    %1 = vector.shape_cast %0 : vector<1x8x32xf32> to vector<8x32xf32>
    %2 = tpu.iota {dimensions = array<i32: 0>} : vector<8x1xi32>
    %c8_i32 = arith.constant 8 : i32
    %3 = vector.broadcast %c8_i32 : i32 to vector<8x1xi32>
    %4 = arith.remsi %2, %3 : vector<8x1xi32>
    %c0_i32 = arith.constant 0 : i32
    %5 = vector.broadcast %c0_i32 : i32 to vector<8x1xi32>
    %6 = arith.cmpi eq, %4, %5 : vector<8x1xi32>
    %c7_i32 = arith.constant 7 : i32
    %7 = vector.broadcast %c7_i32 : i32 to vector<8x1xi32>
    %8 = arith.cmpi eq, %4, %7 : vector<8x1xi32>
    %c1_i32 = arith.constant 1 : i32
    %9 = tpu.dynamic_rotate %1 by %c1_i32 dim 0 : vector<8x32xf32>, i32 -> vector<8x32xf32>
    %cst = arith.constant 0.000000e+00 : f32
    %10 = vector.shape_cast %6 : vector<8x1xi1> to vector<8x1xi1>
    %11 = vector.broadcast %10 : vector<8x1xi1> to vector<8x32xi1>
    %12 = vector.broadcast %cst : f32 to vector<8x32xf32>
    %13 = arith.select %11, %12, %9 : vector<8x32xi1>, vector<8x32xf32>
    %c7_i32_2 = arith.constant 7 : i32
    %14 = tpu.dynamic_rotate %1 by %c7_i32_2 dim 0 : vector<8x32xf32>, i32 -> vector<8x32xf32>
    %cst_3 = arith.constant 0.000000e+00 : f32
    %15 = vector.shape_cast %8 : vector<8x1xi1> to vector<8x1xi1>
    %16 = vector.broadcast %15 : vector<8x1xi1> to vector<8x32xi1>
    %17 = vector.broadcast %cst_3 : f32 to vector<8x32xf32>
    %18 = arith.select %16, %17, %14 : vector<8x32xi1>, vector<8x32xf32>
    %19 = tpu.concatenate %13, %1, %18 in 1 : vector<8x32xf32>, vector<8x32xf32>, vector<8x32xf32> -> vector<8x96xf32>
    %c0_4 = arith.constant 0 : index
    %c0_5 = arith.constant 0 : index
    %20 = vector.load %arg2[%c0_4, %c0_5] : memref<96x64xf32, #tpu.memory_space<vmem>>, vector<96x64xf32>
    %cst_6 = arith.constant dense<0.000000e+00> : vector<8x64xf32>
    %21 = tpu.matmul %19, %20, %cst_6 {dimension_numbers = #tpu.dot_dimension_numbers<[1], [0], [0], [1], [0, 0, 1, 1], [], []>} : vector<8x96xf32>, vector<96x64xf32>, vector<8x64xf32> -> vector<8x64xf32>
    %c0_7 = arith.constant 0 : index
    %c0_8 = arith.constant 0 : index
    %22 = vector.load %arg3[%c0_7, %c0_8] : memref<1x64xf32, #tpu.memory_space<vmem>>, vector<1x64xf32>
    %23 = vector.broadcast %22 : vector<1x64xf32> to vector<8x64xf32>
    %24 = arith.addf %21, %23 : vector<8x64xf32>
    %25 = vector.shape_cast %24 : vector<8x64xf32> to vector<1x8x64xf32>
    %cst_9 = arith.constant dense<0.000000e+00> : vector<1xf32>
    %26 = vector.multi_reduction <add>, %25, %cst_9 [1, 2] : vector<1x8x64xf32> to vector<1xf32>
    %27 = vector.shape_cast %26 : vector<1xf32> to vector<1x1x1xf32>
    %cst_10 = arith.constant 5.120000e+02 : f32
    %28 = vector.broadcast %cst_10 : f32 to vector<1x1x1xf32>
    %29 = arith.divf %27, %28 : vector<1x1x1xf32>
    %30 = arith.mulf %25, %25 : vector<1x8x64xf32>
    %cst_11 = arith.constant dense<0.000000e+00> : vector<1xf32>
    %31 = vector.multi_reduction <add>, %30, %cst_11 [1, 2] : vector<1x8x64xf32> to vector<1xf32>
    %32 = vector.shape_cast %31 : vector<1xf32> to vector<1x1x1xf32>
    %cst_12 = arith.constant 5.120000e+02 : f32
    %33 = vector.broadcast %cst_12 : f32 to vector<1x1x1xf32>
    %34 = arith.divf %32, %33 : vector<1x1x1xf32>
    %35 = arith.mulf %29, %29 : vector<1x1x1xf32>
    %36 = arith.subf %34, %35 : vector<1x1x1xf32>
    %37 = vector.broadcast %29 : vector<1x1x1xf32> to vector<1x8x64xf32>
    %38 = arith.subf %25, %37 : vector<1x8x64xf32>
    %cst_13 = arith.constant 9.99999974E-6 : f32
    %39 = vector.broadcast %cst_13 : f32 to vector<1x1x1xf32>
    %40 = arith.addf %36, %39 : vector<1x1x1xf32>
    %41 = math.rsqrt %40 : vector<1x1x1xf32>
    %42 = vector.broadcast %41 : vector<1x1x1xf32> to vector<1x8x64xf32>
    %43 = arith.mulf %38, %42 : vector<1x8x64xf32>
    %c0_14 = arith.constant 0 : index
    %c0_15 = arith.constant 0 : index
    %44 = vector.load %arg4[%c0_14, %c0_15] : memref<8x64xf32, #tpu.memory_space<vmem>>, vector<8x64xf32>
    %45 = vector.shape_cast %44 : vector<8x64xf32> to vector<1x8x64xf32>
    %46 = arith.mulf %43, %45 : vector<1x8x64xf32>
    %c0_16 = arith.constant 0 : index
    %c0_17 = arith.constant 0 : index
    %47 = vector.load %arg5[%c0_16, %c0_17] : memref<8x64xf32, #tpu.memory_space<vmem>>, vector<8x64xf32>
    %48 = vector.shape_cast %47 : vector<8x64xf32> to vector<1x8x64xf32>
    %49 = arith.addf %46, %48 : vector<1x8x64xf32>
    %50 = vector.shape_cast %49 : vector<1x8x64xf32> to vector<8x64xf32>
    %c1_i32_18 = arith.constant 1 : i32
    %51 = tpu.dynamic_rotate %50 by %c1_i32_18 dim 0 : vector<8x64xf32>, i32 -> vector<8x64xf32>
    %cst_19 = arith.constant 0.000000e+00 : f32
    %52 = vector.shape_cast %6 : vector<8x1xi1> to vector<8x1xi1>
    %53 = vector.broadcast %52 : vector<8x1xi1> to vector<8x64xi1>
    %54 = vector.broadcast %cst_19 : f32 to vector<8x64xf32>
    %55 = arith.select %53, %54, %51 : vector<8x64xi1>, vector<8x64xf32>
    %c7_i32_20 = arith.constant 7 : i32
    %56 = tpu.dynamic_rotate %50 by %c7_i32_20 dim 0 : vector<8x64xf32>, i32 -> vector<8x64xf32>
    %cst_21 = arith.constant 0.000000e+00 : f32
    %57 = vector.shape_cast %8 : vector<8x1xi1> to vector<8x1xi1>
    %58 = vector.broadcast %57 : vector<8x1xi1> to vector<8x64xi1>
    %59 = vector.broadcast %cst_21 : f32 to vector<8x64xf32>
    %60 = arith.select %58, %59, %56 : vector<8x64xi1>, vector<8x64xf32>
    %61 = tpu.concatenate %55, %50, %60 in 1 : vector<8x64xf32>, vector<8x64xf32>, vector<8x64xf32> -> vector<8x192xf32>
    %c0_22 = arith.constant 0 : index
    %c0_23 = arith.constant 0 : index
    %62 = vector.load %arg6[%c0_22, %c0_23] : memref<192x64xf32, #tpu.memory_space<vmem>>, vector<192x64xf32>
    %cst_24 = arith.constant dense<0.000000e+00> : vector<8x64xf32>
    %63 = tpu.matmul %61, %62, %cst_24 {dimension_numbers = #tpu.dot_dimension_numbers<[1], [0], [0], [1], [0, 0, 1, 1], [], []>} : vector<8x192xf32>, vector<192x64xf32>, vector<8x64xf32> -> vector<8x64xf32>
    %c0_25 = arith.constant 0 : index
    %c0_26 = arith.constant 0 : index
    %64 = vector.load %arg7[%c0_25, %c0_26] : memref<1x64xf32, #tpu.memory_space<vmem>>, vector<1x64xf32>
    %65 = vector.broadcast %64 : vector<1x64xf32> to vector<8x64xf32>
    %66 = arith.addf %63, %65 : vector<8x64xf32>
    %67 = vector.shape_cast %66 : vector<8x64xf32> to vector<1x8x64xf32>
    %cst_27 = arith.constant dense<0.000000e+00> : vector<1xf32>
    %68 = vector.multi_reduction <add>, %67, %cst_27 [1, 2] : vector<1x8x64xf32> to vector<1xf32>
    %69 = vector.shape_cast %68 : vector<1xf32> to vector<1x1x1xf32>
    %cst_28 = arith.constant 5.120000e+02 : f32
    %70 = vector.broadcast %cst_28 : f32 to vector<1x1x1xf32>
    %71 = arith.divf %69, %70 : vector<1x1x1xf32>
    %72 = arith.mulf %67, %67 : vector<1x8x64xf32>
    %cst_29 = arith.constant dense<0.000000e+00> : vector<1xf32>
    %73 = vector.multi_reduction <add>, %72, %cst_29 [1, 2] : vector<1x8x64xf32> to vector<1xf32>
    %74 = vector.shape_cast %73 : vector<1xf32> to vector<1x1x1xf32>
    %cst_30 = arith.constant 5.120000e+02 : f32
    %75 = vector.broadcast %cst_30 : f32 to vector<1x1x1xf32>
    %76 = arith.divf %74, %75 : vector<1x1x1xf32>
    %77 = arith.mulf %71, %71 : vector<1x1x1xf32>
    %78 = arith.subf %76, %77 : vector<1x1x1xf32>
    %79 = vector.broadcast %71 : vector<1x1x1xf32> to vector<1x8x64xf32>
    %80 = arith.subf %67, %79 : vector<1x8x64xf32>
    %cst_31 = arith.constant 9.99999974E-6 : f32
    %81 = vector.broadcast %cst_31 : f32 to vector<1x1x1xf32>
    %82 = arith.addf %78, %81 : vector<1x1x1xf32>
    %83 = math.rsqrt %82 : vector<1x1x1xf32>
    %84 = vector.broadcast %83 : vector<1x1x1xf32> to vector<1x8x64xf32>
    %85 = arith.mulf %80, %84 : vector<1x8x64xf32>
    %c0_32 = arith.constant 0 : index
    %c0_33 = arith.constant 0 : index
    %86 = vector.load %arg8[%c0_32, %c0_33] : memref<8x64xf32, #tpu.memory_space<vmem>>, vector<8x64xf32>
    %87 = vector.shape_cast %86 : vector<8x64xf32> to vector<1x8x64xf32>
    %88 = arith.mulf %85, %87 : vector<1x8x64xf32>
    %c0_34 = arith.constant 0 : index
    %c0_35 = arith.constant 0 : index
    %89 = vector.load %arg9[%c0_34, %c0_35] : memref<8x64xf32, #tpu.memory_space<vmem>>, vector<8x64xf32>
    %90 = vector.shape_cast %89 : vector<8x64xf32> to vector<1x8x64xf32>
    %91 = arith.addf %88, %90 : vector<1x8x64xf32>
    %92 = vector.shape_cast %91 : vector<1x8x64xf32> to vector<8x64xf32>
    %c1_i32_36 = arith.constant 1 : i32
    %93 = tpu.dynamic_rotate %92 by %c1_i32_36 dim 0 : vector<8x64xf32>, i32 -> vector<8x64xf32>
    %cst_37 = arith.constant 0.000000e+00 : f32
    %94 = vector.shape_cast %6 : vector<8x1xi1> to vector<8x1xi1>
    %95 = vector.broadcast %94 : vector<8x1xi1> to vector<8x64xi1>
    %96 = vector.broadcast %cst_37 : f32 to vector<8x64xf32>
    %97 = arith.select %95, %96, %93 : vector<8x64xi1>, vector<8x64xf32>
    %c7_i32_38 = arith.constant 7 : i32
    %98 = tpu.dynamic_rotate %92 by %c7_i32_38 dim 0 : vector<8x64xf32>, i32 -> vector<8x64xf32>
    %cst_39 = arith.constant 0.000000e+00 : f32
    %99 = vector.shape_cast %8 : vector<8x1xi1> to vector<8x1xi1>
    %100 = vector.broadcast %99 : vector<8x1xi1> to vector<8x64xi1>
    %101 = vector.broadcast %cst_39 : f32 to vector<8x64xf32>
    %102 = arith.select %100, %101, %98 : vector<8x64xi1>, vector<8x64xf32>
    %103 = tpu.concatenate %97, %92, %102 in 1 : vector<8x64xf32>, vector<8x64xf32>, vector<8x64xf32> -> vector<8x192xf32>
    %c0_40 = arith.constant 0 : index
    %c0_41 = arith.constant 0 : index
    %104 = vector.load %arg10[%c0_40, %c0_41] : memref<192x2xf32, #tpu.memory_space<vmem>>, vector<192x2xf32>
    %cst_42 = arith.constant dense<0.000000e+00> : vector<8x2xf32>
    %105 = tpu.matmul %103, %104, %cst_42 {dimension_numbers = #tpu.dot_dimension_numbers<[1], [0], [0], [1], [0, 0, 1, 1], [], []>} : vector<8x192xf32>, vector<192x2xf32>, vector<8x2xf32> -> vector<8x2xf32>
    %c0_43 = arith.constant 0 : index
    %c0_44 = arith.constant 0 : index
    %106 = vector.load %arg11[%c0_43, %c0_44] : memref<1x2xf32, #tpu.memory_space<vmem>>, vector<1x2xf32>
    %107 = vector.broadcast %106 : vector<1x2xf32> to vector<8x2xf32>
    %108 = arith.addf %105, %107 : vector<8x2xf32>
    %109 = vector.shape_cast %108 : vector<8x2xf32> to vector<1x8x2xf32>
    %cst_45 = arith.constant dense<0.000000e+00> : vector<1xf32>
    %110 = vector.multi_reduction <add>, %109, %cst_45 [1, 2] : vector<1x8x2xf32> to vector<1xf32>
    %111 = vector.shape_cast %110 : vector<1xf32> to vector<1x1x1xf32>
    %cst_46 = arith.constant 1.600000e+01 : f32
    %112 = vector.broadcast %cst_46 : f32 to vector<1x1x1xf32>
    %113 = arith.divf %111, %112 : vector<1x1x1xf32>
    %114 = arith.mulf %109, %109 : vector<1x8x2xf32>
    %cst_47 = arith.constant dense<0.000000e+00> : vector<1xf32>
    %115 = vector.multi_reduction <add>, %114, %cst_47 [1, 2] : vector<1x8x2xf32> to vector<1xf32>
    %116 = vector.shape_cast %115 : vector<1xf32> to vector<1x1x1xf32>
    %cst_48 = arith.constant 1.600000e+01 : f32
    %117 = vector.broadcast %cst_48 : f32 to vector<1x1x1xf32>
    %118 = arith.divf %116, %117 : vector<1x1x1xf32>
    %119 = arith.mulf %113, %113 : vector<1x1x1xf32>
    %120 = arith.subf %118, %119 : vector<1x1x1xf32>
    %121 = vector.broadcast %113 : vector<1x1x1xf32> to vector<1x8x2xf32>
    %122 = arith.subf %109, %121 : vector<1x8x2xf32>
    %cst_49 = arith.constant 9.99999974E-6 : f32
    %123 = vector.broadcast %cst_49 : f32 to vector<1x1x1xf32>
    %124 = arith.addf %120, %123 : vector<1x1x1xf32>
    %125 = math.rsqrt %124 : vector<1x1x1xf32>
    %126 = vector.broadcast %125 : vector<1x1x1xf32> to vector<1x8x2xf32>
    %127 = arith.mulf %122, %126 : vector<1x8x2xf32>
    %c0_50 = arith.constant 0 : index
    %c0_51 = arith.constant 0 : index
    %128 = vector.load %arg12[%c0_50, %c0_51] : memref<8x2xf32, #tpu.memory_space<vmem>>, vector<8x2xf32>
    %129 = vector.shape_cast %128 : vector<8x2xf32> to vector<1x8x2xf32>
    %130 = arith.mulf %127, %129 : vector<1x8x2xf32>
    %c0_52 = arith.constant 0 : index
    %c0_53 = arith.constant 0 : index
    %131 = vector.load %arg13[%c0_52, %c0_53] : memref<8x2xf32, #tpu.memory_space<vmem>>, vector<8x2xf32>
    %132 = vector.shape_cast %131 : vector<8x2xf32> to vector<1x8x2xf32>
    %133 = arith.addf %130, %132 : vector<1x8x2xf32>
    %134 = vector.shape_cast %133 : vector<1x8x2xf32> to vector<8x2xf32>
    %135 = vector.shape_cast %134 : vector<8x2xf32> to vector<1x8x2xf32>
    %cst_54 = arith.constant dense<0xFF800000> : vector<1x2xf32>
    %136 = vector.multi_reduction <maximumf>, %135, %cst_54 [1] : vector<1x8x2xf32> to vector<1x2xf32>
    %137 = vector.shape_cast %136 : vector<1x2xf32> to vector<1x1x2xf32>
    %138 = vector.broadcast %137 : vector<1x1x2xf32> to vector<1x8x2xf32>
    %139 = arith.subf %135, %138 : vector<1x8x2xf32>
    %140 = math.exp %139 : vector<1x8x2xf32>
    %cst_55 = arith.constant dense<0.000000e+00> : vector<1x2xf32>
    %141 = vector.multi_reduction <add>, %140, %cst_55 [1] : vector<1x8x2xf32> to vector<1x2xf32>
    %142 = vector.shape_cast %141 : vector<1x2xf32> to vector<1x1x2xf32>
    %cst_56 = arith.constant 1.000000e+00 : f32
    %143 = vector.broadcast %cst_56 : f32 to vector<1x1x2xf32>
    %144 = arith.divf %143, %142 : vector<1x1x2xf32>
    %145 = vector.broadcast %144 : vector<1x1x2xf32> to vector<1x8x2xf32>
    %146 = arith.mulf %140, %145 : vector<1x8x2xf32>
    %147 = vector.extract_strided_slice %146 {offsets = [0, 0, 0], sizes = [1, 8, 1], strides = [1, 1, 1]} : vector<1x8x2xf32> to vector<1x8x1xf32>
    %148 = vector.extract_strided_slice %146 {offsets = [0, 0, 1], sizes = [1, 8, 1], strides = [1, 1, 1]} : vector<1x8x2xf32> to vector<1x8x1xf32>
    %cst_57 = arith.constant 8.000000e-01 : f32
    %149 = vector.broadcast %cst_57 : f32 to vector<1x8x1xf32>
    %150 = arith.mulf %149, %147 : vector<1x8x1xf32>
    %cst_58 = arith.constant 2.000000e+00 : f32
    %151 = vector.broadcast %cst_58 : f32 to vector<1x8x1xf32>
    %152 = arith.mulf %151, %150 : vector<1x8x1xf32>
    %153 = arith.mulf %152, %150 : vector<1x8x1xf32>
    %cst_59 = arith.constant 9.99999974E-6 : f32
    %154 = vector.broadcast %cst_59 : f32 to vector<1x8x1xf32>
    %155 = arith.addf %154, %153 : vector<1x8x1xf32>
    %cst_60 = arith.constant 1.000000e+00 : f32
    %156 = vector.broadcast %cst_60 : f32 to vector<1x8x1xf32>
    %157 = arith.divf %156, %155 : vector<1x8x1xf32>
    %c0_61 = arith.constant 0 : index
    %c0_62 = arith.constant 0 : index
    %158 = vector.load %arg14[%c0_61, %c0_62] : memref<8x8xf32, #tpu.memory_space<vmem>>, vector<8x8xf32>
    %159 = vector.shape_cast %158 : vector<8x8xf32> to vector<1x8x8xf32>
    %160 = vector.broadcast %157 : vector<1x8x1xf32> to vector<1x8x8xf32>
    %161 = arith.mulf %159, %160 : vector<1x8x8xf32>
    %162 = math.exp %161 : vector<1x8x8xf32>
    %163 = vector.broadcast %148 : vector<1x8x1xf32> to vector<1x8x32xf32>
    %164 = arith.mulf %163, %0 : vector<1x8x32xf32>
    %165 = vector.extract_strided_slice %162 {offsets = [0, 0, 0], sizes = [1, 1, 8], strides = [1, 1, 1]} : vector<1x8x8xf32> to vector<1x1x8xf32>
    %166 = vector.shape_cast %165 : vector<1x1x8xf32> to vector<1x8xf32>
    %167 = vector.shape_cast %166 : vector<1x8xf32> to vector<1x8x1xf32>
    %168 = vector.broadcast %167 : vector<1x8x1xf32> to vector<1x8x32xf32>
    %169 = arith.mulf %168, %164 : vector<1x8x32xf32>
    %cst_63 = arith.constant dense<0.000000e+00> : vector<1x32xf32>
    %170 = vector.multi_reduction <add>, %169, %cst_63 [1] : vector<1x8x32xf32> to vector<1x32xf32>
    %171 = vector.extract_strided_slice %162 {offsets = [0, 1, 0], sizes = [1, 1, 8], strides = [1, 1, 1]} : vector<1x8x8xf32> to vector<1x1x8xf32>
    %172 = vector.shape_cast %171 : vector<1x1x8xf32> to vector<1x8xf32>
    %173 = vector.shape_cast %172 : vector<1x8xf32> to vector<1x8x1xf32>
    %174 = vector.broadcast %173 : vector<1x8x1xf32> to vector<1x8x32xf32>
    %175 = arith.mulf %174, %164 : vector<1x8x32xf32>
    %cst_64 = arith.constant dense<0.000000e+00> : vector<1x32xf32>
    %176 = vector.multi_reduction <add>, %175, %cst_64 [1] : vector<1x8x32xf32> to vector<1x32xf32>
    %177 = vector.extract_strided_slice %162 {offsets = [0, 2, 0], sizes = [1, 1, 8], strides = [1, 1, 1]} : vector<1x8x8xf32> to vector<1x1x8xf32>
    %178 = vector.shape_cast %177 : vector<1x1x8xf32> to vector<1x8xf32>
    %179 = vector.shape_cast %178 : vector<1x8xf32> to vector<1x8x1xf32>
    %180 = vector.broadcast %179 : vector<1x8x1xf32> to vector<1x8x32xf32>
    %181 = arith.mulf %180, %164 : vector<1x8x32xf32>
    %cst_65 = arith.constant dense<0.000000e+00> : vector<1x32xf32>
    %182 = vector.multi_reduction <add>, %181, %cst_65 [1] : vector<1x8x32xf32> to vector<1x32xf32>
    %183 = vector.extract_strided_slice %162 {offsets = [0, 3, 0], sizes = [1, 1, 8], strides = [1, 1, 1]} : vector<1x8x8xf32> to vector<1x1x8xf32>
    %184 = vector.shape_cast %183 : vector<1x1x8xf32> to vector<1x8xf32>
    %185 = vector.shape_cast %184 : vector<1x8xf32> to vector<1x8x1xf32>
    %186 = vector.broadcast %185 : vector<1x8x1xf32> to vector<1x8x32xf32>
    %187 = arith.mulf %186, %164 : vector<1x8x32xf32>
    %cst_66 = arith.constant dense<0.000000e+00> : vector<1x32xf32>
    %188 = vector.multi_reduction <add>, %187, %cst_66 [1] : vector<1x8x32xf32> to vector<1x32xf32>
    %189 = vector.extract_strided_slice %162 {offsets = [0, 4, 0], sizes = [1, 1, 8], strides = [1, 1, 1]} : vector<1x8x8xf32> to vector<1x1x8xf32>
    %190 = vector.shape_cast %189 : vector<1x1x8xf32> to vector<1x8xf32>
    %191 = vector.shape_cast %190 : vector<1x8xf32> to vector<1x8x1xf32>
    %192 = vector.broadcast %191 : vector<1x8x1xf32> to vector<1x8x32xf32>
    %193 = arith.mulf %192, %164 : vector<1x8x32xf32>
    %cst_67 = arith.constant dense<0.000000e+00> : vector<1x32xf32>
    %194 = vector.multi_reduction <add>, %193, %cst_67 [1] : vector<1x8x32xf32> to vector<1x32xf32>
    %195 = vector.extract_strided_slice %162 {offsets = [0, 5, 0], sizes = [1, 1, 8], strides = [1, 1, 1]} : vector<1x8x8xf32> to vector<1x1x8xf32>
    %196 = vector.shape_cast %195 : vector<1x1x8xf32> to vector<1x8xf32>
    %197 = vector.shape_cast %196 : vector<1x8xf32> to vector<1x8x1xf32>
    %198 = vector.broadcast %197 : vector<1x8x1xf32> to vector<1x8x32xf32>
    %199 = arith.mulf %198, %164 : vector<1x8x32xf32>
    %cst_68 = arith.constant dense<0.000000e+00> : vector<1x32xf32>
    %200 = vector.multi_reduction <add>, %199, %cst_68 [1] : vector<1x8x32xf32> to vector<1x32xf32>
    %201 = vector.extract_strided_slice %162 {offsets = [0, 6, 0], sizes = [1, 1, 8], strides = [1, 1, 1]} : vector<1x8x8xf32> to vector<1x1x8xf32>
    %202 = vector.shape_cast %201 : vector<1x1x8xf32> to vector<1x8xf32>
    %203 = vector.shape_cast %202 : vector<1x8xf32> to vector<1x8x1xf32>
    %204 = vector.broadcast %203 : vector<1x8x1xf32> to vector<1x8x32xf32>
    %205 = arith.mulf %204, %164 : vector<1x8x32xf32>
    %cst_69 = arith.constant dense<0.000000e+00> : vector<1x32xf32>
    %206 = vector.multi_reduction <add>, %205, %cst_69 [1] : vector<1x8x32xf32> to vector<1x32xf32>
    %207 = vector.extract_strided_slice %162 {offsets = [0, 7, 0], sizes = [1, 1, 8], strides = [1, 1, 1]} : vector<1x8x8xf32> to vector<1x1x8xf32>
    %208 = vector.shape_cast %207 : vector<1x1x8xf32> to vector<1x8xf32>
    %209 = vector.shape_cast %208 : vector<1x8xf32> to vector<1x8x1xf32>
    %210 = vector.broadcast %209 : vector<1x8x1xf32> to vector<1x8x32xf32>
    %211 = arith.mulf %210, %164 : vector<1x8x32xf32>
    %cst_70 = arith.constant dense<0.000000e+00> : vector<1x32xf32>
    %212 = vector.multi_reduction <add>, %211, %cst_70 [1] : vector<1x8x32xf32> to vector<1x32xf32>
    %213 = tpu.concatenate %170, %176, %182, %188, %194, %200, %206, %212 in 1 : vector<1x32xf32>, vector<1x32xf32>, vector<1x32xf32>, vector<1x32xf32>, vector<1x32xf32>, vector<1x32xf32>, vector<1x32xf32>, vector<1x32xf32> -> vector<1x256xf32>
    %214 = vector.shape_cast %213 : vector<1x256xf32> to vector<1x1x256xf32>
    %c0_71 = arith.constant 0 : index
    %c0_72 = arith.constant 0 : index
    %c0_73 = arith.constant 0 : index
    %215 = vector.load %arg15[%c0_71, %c0_72, %c0_73] : memref<1x1x256xf32, #tpu.memory_space<vmem>>, vector<1x1x256xf32>
    tpu.vector_store %arg15[%c0_71, %c0_72, %c0_73], %214 {strides = array<i32>} : memref<1x1x256xf32, #tpu.memory_space<vmem>>, vector<1x1x256xf32>,
    return
  }
  func.func @transform_0(%arg0: i32) -> (i32, i32, i32) {
    %c0_i32 = arith.constant 0 : i32
    %c0_i32_0 = arith.constant 0 : i32
    %c0_i32_1 = arith.constant 0 : i32
    return %arg0, %c0_i32, %c0_i32_0 : i32, i32, i32
  }
  func.func @transform_1(%arg0: i32) -> (i32, i32) {
    %c0_i32 = arith.constant 0 : i32
    %c0_i32_0 = arith.constant 0 : i32
    %c0_i32_1 = arith.constant 0 : i32
    return %c0_i32, %c0_i32_0 : i32, i32
  }
  func.func @transform_2(%arg0: i32) -> (i32, i32) {
    %c0_i32 = arith.constant 0 : i32
    %c0_i32_0 = arith.constant 0 : i32
    %c0_i32_1 = arith.constant 0 : i32
    return %c0_i32, %c0_i32_0 : i32, i32
  }
  func.func @transform_3(%arg0: i32) -> (i32, i32) {
    %c0_i32 = arith.constant 0 : i32
    %c0_i32_0 = arith.constant 0 : i32
    %c0_i32_1 = arith.constant 0 : i32
    return %c0_i32, %c0_i32_0 : i32, i32
  }
  func.func @transform_4(%arg0: i32) -> (i32, i32) {
    %c0_i32 = arith.constant 0 : i32
    %c0_i32_0 = arith.constant 0 : i32
    %c0_i32_1 = arith.constant 0 : i32
    return %c0_i32, %c0_i32_0 : i32, i32
  }
  func.func @transform_5(%arg0: i32) -> (i32, i32) {
    %c0_i32 = arith.constant 0 : i32
    %c0_i32_0 = arith.constant 0 : i32
    %c0_i32_1 = arith.constant 0 : i32
    return %c0_i32, %c0_i32_0 : i32, i32
  }
  func.func @transform_6(%arg0: i32) -> (i32, i32) {
    %c0_i32 = arith.constant 0 : i32
    %c0_i32_0 = arith.constant 0 : i32
    %c0_i32_1 = arith.constant 0 : i32
    return %c0_i32, %c0_i32_0 : i32, i32
  }
  func.func @transform_7(%arg0: i32) -> (i32, i32) {
    %c0_i32 = arith.constant 0 : i32
    %c0_i32_0 = arith.constant 0 : i32
    %c0_i32_1 = arith.constant 0 : i32
    return %c0_i32, %c0_i32_0 : i32, i32
  }
  func.func @transform_8(%arg0: i32) -> (i32, i32) {
    %c0_i32 = arith.constant 0 : i32
    %c0_i32_0 = arith.constant 0 : i32
    %c0_i32_1 = arith.constant 0 : i32
    return %c0_i32, %c0_i32_0 : i32, i32
  }
  func.func @transform_9(%arg0: i32) -> (i32, i32) {
    %c0_i32 = arith.constant 0 : i32
    %c0_i32_0 = arith.constant 0 : i32
    %c0_i32_1 = arith.constant 0 : i32
    return %c0_i32, %c0_i32_0 : i32, i32
  }
  func.func @transform_10(%arg0: i32) -> (i32, i32) {
    %c0_i32 = arith.constant 0 : i32
    %c0_i32_0 = arith.constant 0 : i32
    %c0_i32_1 = arith.constant 0 : i32
    return %c0_i32, %c0_i32_0 : i32, i32
  }
  func.func @transform_11(%arg0: i32) -> (i32, i32) {
    %c0_i32 = arith.constant 0 : i32
    %c0_i32_0 = arith.constant 0 : i32
    %c0_i32_1 = arith.constant 0 : i32
    return %c0_i32, %c0_i32_0 : i32, i32
  }
  func.func @transform_12(%arg0: i32) -> (i32, i32) {
    %c0_i32 = arith.constant 0 : i32
    %c0_i32_0 = arith.constant 0 : i32
    %c0_i32_1 = arith.constant 0 : i32
    return %c0_i32, %c0_i32_0 : i32, i32
  }
  func.func @transform_13(%arg0: i32) -> (i32, i32) {
    %c0_i32 = arith.constant 0 : i32
    %c0_i32_0 = arith.constant 0 : i32
    %c0_i32_1 = arith.constant 0 : i32
    return %c0_i32, %c0_i32_0 : i32, i32
  }
  func.func @transform_14(%arg0: i32) -> (i32, i32, i32) {
    %c0_i32 = arith.constant 0 : i32
    %c0_i32_0 = arith.constant 0 : i32
    %c0_i32_1 = arith.constant 0 : i32
    return %arg0, %c0_i32, %c0_i32_0 : i32, i32, i32
  }
}

</mosaic_0001>

<bundles_post_ra>
// kernel: tpu_custom_call.1
= control target key start
LH: loop header
LB: loop body
LE: loop exit
PB: predicated region body
PF: predicated region fallthrough
CT: control target
= control target key end

     0   :  { %s1761_s0 = inlined_call_operand.vmem [shape: f32[2,8,32], index: 0, kind: input, shape index: {}]   ;;  %s1762_s1 = inlined_call_operand.vmem [shape: f32[96,64], index: 1, kind: input, shape index: {}]   ;;  %s1763_s2 = inlined_call_operand.vmem [shape: f32[1,64], index: 2, kind: input, shape index: {}]   ;;  %s1764_s3 = inlined_call_operand.vmem [shape: f32[8,64], index: 3, kind: input, shape index: {}]   ;;  %s1765_s4 = inlined_call_operand.vmem [shape: f32[8,64], index: 4, kind: input, shape index: {}]   ;;  %s1766_s5 = inlined_call_operand.vmem [shape: f32[192,64], index: 5, kind: input, shape index: {}]   ;;  %s1767_s6 = inlined_call_operand.vmem [shape: f32[1,64], index: 6, kind: input, shape index: {}]   ;;  %s1768_s7 = inlined_call_operand.vmem [shape: f32[8,64], index: 7, kind: input, shape index: {}]   ;;  %s1769_s8 = inlined_call_operand.vmem [shape: f32[8,64], index: 8, kind: input, shape index: {}]   ;;  %s1770_s9 = inlined_call_operand.vmem [shape: f32[192,2], index: 9, kind: input, shape index: {}]   ;;  %s1771_s10 = inlined_call_operand.vmem [shape: f32[1,2], index: 10, kind: input, shape index: {}]   ;;  %s1772_s11 = inlined_call_operand.vmem [shape: f32[8,2], index: 11, kind: input, shape index: {}]   ;;  %s1773_s12 = inlined_call_operand.vmem [shape: f32[8,2], index: 12, kind: input, shape index: {}]   ;;  %s1774_s13 = inlined_call_operand.vmem [shape: f32[8,8], index: 13, kind: input, shape index: {}]   ;;  %s1775_s14 = inlined_call_operand.hbm [shape: f32[2,1,256], index: 14, kind: output, shape index: {}]  }
   0x1   :  { %1783 = sst [smem:[#allocation8_spill]] %s1761_s0 }
   0x2   :  { %19 = vsyncpa [#allocation3], 0 }
   0x3   :  { %21 = vsyncpa [#allocation3 + $0x1], 0  ;;  %s1364_s29 = smov 0   ;;  %s1366_s30 = smov 0  }
   0x4   :  { %s1368_s15 = smov 0   ;;  %s1370_s16 = smov 0  }
   0x5 LB: > { %1784 = sst [smem:[#allocation5_spill]] %s1276_s15  ;;  %s1385_s17 = sadd.s32 4294967295, %s1280_s16   ;;  %s1280_s16 = sphi %s1370_s16, %s1796_s16   ;;  %s1276_s15 = sphi %s1368_s15, %s1798_s15   ;;  %s1272_s30 = sphi %s1366_s30, %s1800_s30   ;;  %s1268_s29 = sphi %s1364_s29, %s1799_s29  }
   0x6   : > { %s1133_s18 = sadd.s32 4294967294, %s1280_s16   ;;  %s1389_s19 = sadd.s32 1, %s1280_s16  }
   0x7   : > { %1785 = sst [smem:[#allocation6_spill]] %s1389_s19  ;;  %s333_s20 = sadd.s32 1, %s1276_s15 }
   0x8   : > { %s330_s21 = ssub.s32 %s1280_s16, %s1389_s19  ;;  %p343_p0 = scmp.ne.s32.totalorder %s1276_s15, %s1272_s30 }
   0x9   : > { %p331_p1 = scmp.eq.s32.totalorder %s330_s21, 0  ;;  %p344_p2 = scmp.eq.s32.totalorder %s1385_s17, 1 }
   0xa   : > { %p349_p3 = scmp.ne.s32.totalorder %s1272_s30, %s1268_s29  ;;  %p350_p4 = scmp.eq.s32.totalorder %s1133_s18, 1 }
   0xb   : > { %s1400_s22 = scalar_select %p331_p1, %s1276_s15, %s333_s20  }
   0xc   : > { %p1402_p5 = por %p344_p2, %p343_p0  ;;  %p1406_p6 = por %p350_p4, %p349_p3 }
   0xd   : > { %1786 = sst [smem:[#allocation7_spill]] %s1400_s22  ;;  %p1136_p7 = scmp.ge.s32.totalorder %s1280_s16, 1 }
   0xe   : > { %p414_p8 = scmp.lt.s32.totalorder %s1280_s16, 3 }
  0x10   : > { %p415_p9 = pnand %p1136_p7, %p414_p8 }
  0x11   : > { %p459_p10 = scmp.lt.s32.totalorder (!%p415_p9), %s1385_s17, 1  ;;  %s1789_s0 = sld [smem:[#allocation8_spill]] (!%p415_p9) }
  0x12   : > { %418 = sbr.rel (%p415_p9) target bundleno = 1687 (0x697), region = 76  ;;  %s1781_s25 = smov (!%p415_p9), 64  }
  0x13   : > { %s1794_s26 = smov (!%p415_p9), 64   ;;  %s1143_s28 = sshll.u32 (!%p415_p9), %s1385_s17, 1 }
  0x14   : > { %s1069_s19 = scalar_lea.hbm (!%p415_p9), %s1775_s14, %s1143_s28  ;;  %s1238_s20 = scalar_lea.hbm (!%p415_p9), %s1775_s14, 4 }
  0x17   : > { %v464_v0 = vlaneseq  ;;  %v506_v1 = vld [vmem:[%s1762_s1 + $0x58] sm:$0xff]  ;;  %v505_v2 = vld [vmem:[%s1762_s1 + $0x50] sm:$0xff]  ;;  %s460_s18 = scalar_select %p459_p10, %s1385_s17, 1  ;;  %v504_v4 = vld [vmem:[%s1762_s1 + $0x48] sm:$0xff]  ;;  %vm491_vm2 = vcmask 261120   ;;  %vm493_vm3 = vcmask 523264  }
  0x18   : > { %519 = vmatpush.msra.mxu0 %v506_v1  ;;  %v503_v5 = vld [vmem:[%s1762_s1 + $0x40] sm:$0xff]  ;;  %v502_v8 = vld [vmem:[%s1762_s1 + $0x38] sm:$0xff]  ;;  %v501_v10 = vld [vmem:[%s1762_s1 + $0x30] sm:$0xff]  ;;  %vm511_vm4 = vcmask 785408   ;;  %v1284_v32 = vmov 512.0   ;;  %vm782_vm12 = vcmask 15360  }
  0x19   : > { %v1421_v3 = vshrl.u32 %v464_v0, 7  ;;  %s1138_s22 = sshll.u32 %s460_s18, 3  ;;  %s1779_s18 = smov 32   ;;  %v500_v12 = vld [vmem:[%s1762_s1 + $0x28] sm:$0xff]  ;;  %v499_v14 = vld [vmem:[%s1762_s1 + $0x20] sm:$0xff]  ;;  %v498_v15 = vld [vmem:[%s1762_s1 + $0x18] sm:$0xff]  ;;  %1200 = vrcp.f32 %v1284_v32 }
  0x1a   : > { %520 = vmatpush.msra.mxu0 %v505_v2  ;;  %s462_s27 = scalar_lea.vmem %s1789_s0, %s1138_s22  ;;  %v497_v16 = vld [vmem:[%s1762_s1 + $0x10] sm:$0xff]  ;;  %v496_v17 = vld [vmem:[%s1762_s1 + $0x8] sm:$0xff]  ;;  %v495_v18 = vld [vmem:[%s1762_s1] sm:$0xff]  ;;  %v1285_v21 = vmov 16.0  }
  0x1b   : > { %1195 = vset.pattern.permute.xlu1 %v1421_v3  ;;  %v470_v6 = vand.u32 7, %v1421_v3  ;;  %v1434_v7 = vld [vmem:[%s462_s27] sm:$0xff]  ;;  %v614_v38 = vld [vmem:[%s1766_s5 + $0xb8] sm:$0xff]  ;;  %v613_v39 = vld [vmem:[%s1766_s5 + $0xb0] sm:$0xff]  ;;  %s1288_s27 = smov 96  }
  0x1c   : > { %521 = vmatpush.msra.mxu0 %v504_v4  ;;  %484 = vrot.lane.b32.xlu0 %v1434_v7, %s1779_s18  ;;  %v479_v9 = vrot.slane %v1434_v7, 1  ;;  %v475_v20 = vrot.slane %v1434_v7, 7  ;;  %v1197_v26 = vld [vmem:[%s1763_s2] ss:$0 sm:$0xff]  ;;  %v612_v41 = vld [vmem:[%s1766_s5 + $0xa8] sm:$0xff]  ;;  %v610_v47 = vld [vmem:[%s1766_s5 + $0x98] sm:$0xff] }
  0x1d   : > { %vm1445_vm0 = vcmp.eq.s32.totalorder %v470_v6, 7  ;;  %vm1471_vm1 = vcmp.eq.s32.totalorder %v470_v6, 0  ;;  %650 = vmatpush.msra.mxu2 %v614_v38  ;;  %v611_v44 = vld [vmem:[%s1766_s5 + $0xa0] sm:$0xff]  ;;  %v609_v51 = vld [vmem:[%s1766_s5 + $0x90] sm:$0xff]  ;;  %v608_v53 = vld [vmem:[%s1766_s5 + $0x88] sm:$0xff]  ;;  %s1073_s18 = sshll.u32 %s1069_s19, 4  ;;  %s1074_s18 = int_to_ptr.hbm [resolvable:$true] %s1073_s18 }
  0x1e   : > { %522 = vmatpush.msra.mxu0 %v503_v5  ;;  %v482_v13 = vsel %vm1445_vm0, 0.0, %v479_v9  ;;  %v478_v22 = vsel %vm1471_vm1, 0.0, %v475_v20  ;;  %v607_v61 = vld [vmem:[%s1766_s5 + $0x80] sm:$0xff]  ;;  %v606_v1 = vld [vmem:[%s1766_s5 + $0x78] sm:$0xff]  ;;  %v605_v2 = vld [vmem:[%s1766_s5 + $0x70] sm:$0xff] }
  0x1f   : > { %v1201_v33 = vpop.eup %1200  ;;  %651 = vmatpush.msra.mxu2 %v613_v39  ;;  %622 = vmatpush.msra.mxu1 %v606_v1  ;;  %v604_v5 = vld [vmem:[%s1766_s5 + $0x68] sm:$0xff]  ;;  %v602_v9 = vld [vmem:[%s1766_s5 + $0x58] sm:$0xff]  ;;  %v1199_v11 = vld [vmem:[%s1771_s10] ss:$0 sm:$0xff] }
  0x20   : > { %523 = vmatpush.msra.mxu0 %v502_v8  ;;  %v545_v34 = vmul.f32 512.0, %v1201_v33  ;;  %vm549_vm5 = vweird.f32 %v1201_v33  ;;  %v603_v8 = vld [vmem:[%s1766_s5 + $0x60] sm:$0xff]  ;;  %v728_v1 = vld [vmem:[%s1770_s9 + $0x88] sm:$0xff] }
  0x21   : > { %652 = vmatpush.msra.mxu2 %v612_v41  ;;  %623 = vmatpush.msra.mxu1 %v605_v2 }
  0x22   : > { %524 = vmatpush.msra.mxu0 %v501_v10  ;;  %v546_v37 = vsub.f32 1.0, %v545_v34  ;;  %v601_v10 = vld [vmem:[%s1766_s5 + $0x50] sm:$0xff] }
  0x23   : > { %653 = vmatpush.msra.mxu2 %v611_v44  ;;  %624 = vmatpush.msra.mxu1 %v604_v5 }
  0x24   : > { %525 = vmatpush.msra.mxu0 %v500_v12  ;;  %488 = vrot.lane.b32.xlu0 %v482_v13, %s1781_s25  ;;  %v547_v43 = vmul.f32 %v1201_v33, %v546_v37  ;;  %v600_v12 = vld [vmem:[%s1766_s5 + $0x48] sm:$0xff]  ;;  %v591_v37 = vld [vmem:[%s1766_s5] sm:$0xff]  ;;  %s1795_s25 = smov 32  }
  0x25   : > { %654 = vmatpush.msra.mxu2 %v610_v47  ;;  %625 = vmatpush.msra.mxu1 %v603_v8 }
  0x26   : > { %526 = vmatpush.msra.mxu0 %v499_v14  ;;  %v548_v50 = vadd.f32 %v1201_v33, %v547_v43 }
  0x27   : > { %655 = vmatpush.msra.mxu2 %v609_v51  ;;  %626 = vmatpush.msra.mxu1 %v602_v9  ;;  %v733_v51 = vld [vmem:[%s1770_s9 + $0xb0] sm:$0xff] }
  0x28   : > { %527 = vmatpush.msra.mxu0 %v498_v15  ;;  %v1511_v56 = vsel %vm549_vm5, %v1201_v33, %v548_v50  ;;  %v599_v15 = vld [vmem:[%s1766_s5 + $0x40] sm:$0xff]  ;;  %v592_v33 = vld [vmem:[%s1766_s5 + $0x8] sm:$0xff]  ;;  %v734_v50 = vld [vmem:[%s1770_s9 + $0xb8] sm:$0xff] }
  0x29   : > { %656 = vmatpush.msra.mxu2 %v608_v53  ;;  %627 = vmatpush.msra.mxu1 %v601_v10 }
  0x2a   : > { %528 = vmatpush.msra.mxu0 %v497_v16 }
  0x2b   : > { %657 = vmatpush.msra.mxu2 %v607_v61  ;;  %628 = vmatpush.msra.mxu1 %v600_v12  ;;  %v729_v61 = vld [vmem:[%s1770_s9 + $0x90] sm:$0xff] }
  0x2c   : > { %529 = vmatpush.msra.mxu0 %v496_v17  ;;  %v598_v17 = vld [vmem:[%s1766_s5 + $0x38] sm:$0xff] }
  0x2d   : > { %629 = vmatpush.msra.mxu1 %v599_v15  ;;  %770 = vmatpush.msrb.mxu2 %v734_v50 }
  0x2e   : > { %530 = vmatpush.msra.mxu0 %v495_v18 }
  0x2f   : > { %630 = vmatpush.msra.mxu1 %v598_v17  ;;  %771 = vmatpush.msrb.mxu2 %v733_v51  ;;  %v725_v17 = vld [vmem:[%s1770_s9 + $0x70] sm:$0xff] }
  0x8e   : > { %v485_v19 = vpop.permute.xlu0 %484 }
  0x8f   : > { %v492_v23 = vsel %vm491_vm2, %v478_v22, %v485_v19  ;;  %v597_v19 = vld [vmem:[%s1766_s5 + $0x30] sm:$0xff]  ;;  %v596_v22 = vld [vmem:[%s1766_s5 + $0x28] sm:$0xff] }
  0x90   : > { %631 = vmatpush.msra.mxu1 %v597_v19  ;;  %v724_v19 = vld [vmem:[%s1770_s9 + $0x68] sm:$0xff] }
  0x92   : > { %632 = vmatpush.msra.mxu1 %v596_v22  ;;  %v722_v22 = vld [vmem:[%s1770_s9 + $0x58] sm:$0xff] }
  0x96   : > { %v489_v24 = vpop.permute.xlu0 %488 }
  0x97   : > { %v494_v25 = vsel %vm493_vm3, %v492_v23, %v489_v24  ;;  %v595_v24 = vld [vmem:[%s1766_s5 + $0x20] sm:$0xff] }
  0x98   : > { %1139 = vmatmul.msk.f32.vlgmr.msra.gmra.mxu0 %vm511_vm4, %v494_v25  ;;  %633 = vmatpush.msra.mxu1 %v595_v24  ;;  %v720_v24 = vld [vmem:[%s1770_s9 + $0x48] sm:$0xff] }
 0x115   : > { %v532_v27 = vpop.f32.mrf.mxu0 }
 0x116   : > { %v1483_v28 = vadd.f32 %v1197_v26, %v532_v27  ;;  %v578_v27 = vld [vmem:[%s1764_s3] sm:$0xff] }
 0x118   : > { %v535_v29 = vsel %vm493_vm3, %v1483_v28, 0.0  ;;  %v552_v30 = vmul.f32 %v1483_v28, %v1483_v28 }
 0x119   : > { %536 = vadd.xlane.f32.xlu1 %v535_v29  ;;  %v594_v29 = vld [vmem:[%s1766_s5 + $0x18] sm:$0xff] }
 0x11a   : > { %v553_v31 = vsel %vm493_vm3, %v552_v30, 0.0  ;;  %634 = vmatpush.msra.mxu1 %v594_v29 }
 0x121   : > { %554 = vadd.xlane.f32.xlu1 %v553_v31  ;;  %v580_v31 = vld [vmem:[%s1765_s4] sm:$0xff] }
 0x18c   : > { %v537_v35 = vpop.xlane.xlu1 %536 }
 0x18d   : > { %v538_v36 = vrot.slane %v537_v35, 4 }
 0x18f   : > { %v539_v40 = vadd.f32 %v538_v36, %v537_v35 }
 0x191   : > { %v540_v42 = vrot.slane %v539_v40, 2 }
 0x193   : > { %v541_v45 = vadd.f32 %v540_v42, %v539_v40  ;;  %v1198_v42 = vld [vmem:[%s1767_s6] ss:$0 sm:$0xff] }
 0x194   : > { %v555_v46 = vpop.xlane.xlu1 %554 }
 0x195   : > { %v542_v48 = vrot.slane %v541_v45, 1  ;;  %v556_v49 = vrot.slane %v555_v46, 4 }
 0x197   : > { %v557_v52 = vadd.f32 %v556_v49, %v555_v46  ;;  %v543_v54 = vadd.f32 %v542_v48, %v541_v45 }
 0x199   : > { %v558_v55 = vrot.slane %v557_v52, 2  ;;  %v551_v58 = vmul.f32 %v1511_v56, %v543_v54  ;;  %v731_v54 = vld [vmem:[%s1770_s9 + $0xa0] sm:$0xff] }
 0x19b   : > { %v559_v57 = vadd.f32 %v558_v55, %v557_v52  ;;  %v563_v62 = vmul.f32 %v551_v58, %v551_v58  ;;  %v565_v25 = vsub.f32 %v1483_v28, %v551_v58  ;;  %v593_v28 = vld [vmem:[%s1766_s5 + $0x10] sm:$0xff]  ;;  %v732_v52 = vld [vmem:[%s1770_s9 + $0xa8] sm:$0xff]  ;;  %v730_v58 = vld [vmem:[%s1770_s9 + $0x98] sm:$0xff] }
 0x19c   : > { %635 = vmatpush.msra.mxu1 %v593_v28  ;;  %772 = vmatpush.msrb.mxu2 %v732_v52  ;;  %v717_v28 = vld [vmem:[%s1770_s9 + $0x30] sm:$0xff] }
 0x19d   : > { %v560_v59 = vrot.slane %v559_v57, 1 }
 0x19e   : > { %636 = vmatpush.msra.mxu1 %v592_v33  ;;  %773 = vmatpush.msrb.mxu2 %v731_v54  ;;  %v716_v33 = vld [vmem:[%s1770_s9 + $0x28] sm:$0xff] }
 0x19f   : > { %v561_v60 = vadd.f32 %v560_v59, %v559_v57 }
 0x1a0   : > { %637 = vmatpush.msra.mxu1 %v591_v37  ;;  %774 = vmatpush.msrb.mxu2 %v730_v58 }
 0x1a1   : > { %v562_v63 = vmul.f32 %v561_v60, %v1511_v56 }
 0x1a2   : > { %775 = vmatpush.msrb.mxu2 %v729_v61 }
 0x1a3   : > { %v564_v4 = vsub.f32 %v562_v63, %v563_v62 }
 0x1a4   : > { %776 = vmatpush.msrb.mxu2 %v728_v1 }
 0x1a5   : > { %v566_v6 = vadd.f32 1e-05, %v564_v4 }
 0x1a7   : > { %1202 = vrsqrt.f32 %v566_v6  ;;  %vm573_vm7 = vweird.f32 %v566_v6 }
 0x1ad   : > { %v1203_v13 = vpop.eup %1202 }
 0x1ae   : > { %v568_v14 = vmul.f32 %v1203_v13, %v566_v6  ;;  %vm574_vm6 = vweird.f32 %v1203_v13 }
 0x1af   : > { %vm575_vm8 = vmor %vm573_vm7, %vm574_vm6 }
 0x1b0   : > { %v569_v16 = vmul.f32 %v1203_v13, %v568_v14 }
 0x1b2   : > { %v570_v18 = vmul.f32 0.5, %v569_v16  ;;  %v726_v16 = vld [vmem:[%s1770_s9 + $0x78] sm:$0xff] }
 0x1b3   : > { %742 = vmatpush.msra.mxu3 %v726_v16 }
 0x1b4   : > { %v571_v20 = vsub.f32 1.5, %v570_v18 }
 0x1b5   : > { %743 = vmatpush.msra.mxu3 %v725_v17 }
 0x1b6   : > { %v572_v23 = vmul.f32 %v1203_v13, %v571_v20 }
 0x1b7   : > { %744 = vmatpush.msra.mxu3 %v724_v19 }
 0x1b8   : > { %v576_v26 = vsel %vm575_vm8, %v1203_v13, %v572_v23  ;;  %v727_v13 = vld [vmem:[%s1770_s9 + $0x80] sm:$0xff]  ;;  %v721_v23 = vld [vmem:[%s1770_s9 + $0x50] sm:$0xff] }
 0x1b9   : > { %v577_v30 = vmul.f32 %v576_v26, %v565_v25  ;;  %777 = vmatpush.msrb.mxu2 %v727_v13 }
 0x1bb   : > { %v579_v32 = vmul.f32 %v578_v27, %v577_v30  ;;  %v719_v27 = vld [vmem:[%s1770_s9 + $0x40] sm:$0xff]  ;;  %v718_v30 = vld [vmem:[%s1770_s9 + $0x38] sm:$0xff] }
 0x1bd   : > { %v581_v34 = vadd.f32 %v580_v31, %v579_v32 }
 0x1bf   : > { %587 = vrot.lane.b32.xlu2 %v581_v34, %s1794_s26  ;;  %v584_v35 = vrot.slane %v581_v34, 1  ;;  %v582_v38 = vrot.slane %v581_v34, 7 }
 0x1c1   : > { %v585_v36 = vsel %vm1445_vm0, 0.0, %v584_v35  ;;  %v583_v40 = vsel %vm1471_vm1, 0.0, %v582_v38  ;;  %v715_v35 = vld [vmem:[%s1770_s9 + $0x20] sm:$0xff] }
 0x1c2   : > { %1140 = vmatmul.msk.f32.vlgmr.msra.gmra.mxu2 %vm493_vm3, %v585_v36  ;;  %v698_v38 = vld [vmem:[%s1768_s7] sm:$0xff] }
 0x219   : > { %v588_v39 = vpop.permute.xlu2 %587 }
 0x21a   : > { %v590_v41 = vsel %vm493_vm3, %v583_v40, %v588_v39  ;;  %v714_v39 = vld [vmem:[%s1770_s9 + $0x18] sm:$0xff] }
 0x21b   : > { %638 = vmatmul.f32.vlgmr.msra.gmra.mxu1 %v590_v41  ;;  %v700_v41 = vld [vmem:[%s1769_s8] sm:$0xff] }
 0x245   : > { %v659_v45 = vpop.f32.mrf.mxu2 }
 0x298   : > { %v639_v43 = vpop.f32.mrf.mxu1 }
 0x299   : > { %v640_v44 = vadd.f32 %v1198_v42, %v639_v43  ;;  %v713_v42 = vld [vmem:[%s1770_s9 + $0x10] sm:$0xff] }
 0x29b   : > { %v1583_v46 = vadd.f32 %v659_v45, %v640_v44  ;;  %v712_v44 = vld [vmem:[%s1770_s9 + $0x8] sm:$0xff] }
 0x29d   : > { %v662_v47 = vsel %vm493_vm3, %v1583_v46, 0.0  ;;  %v672_v48 = vmul.f32 %v1583_v46, %v1583_v46 }
 0x29e   : > { %663 = vadd.xlane.f32.xlu2 %v662_v47 }
 0x29f   : > { %v673_v49 = vsel %vm493_vm3, %v672_v48, 0.0  ;;  %v711_v48 = vld [vmem:[%s1770_s9] sm:$0xff] }
 0x2a0   : > { %674 = vadd.xlane.f32.xlu0 %v673_v49 }
 0x311   : > { %v664_v53 = vpop.xlane.xlu2 %663 }
 0x312   : > { %v665_v55 = vrot.slane %v664_v53, 4 }
 0x313   : > { %v675_v57 = vpop.xlane.xlu0 %674 }
 0x314   : > { %v666_v59 = vadd.f32 %v665_v55, %v664_v53  ;;  %v676_v60 = vrot.slane %v675_v57, 4 }
 0x316   : > { %v667_v62 = vrot.slane %v666_v59, 2  ;;  %v677_v63 = vadd.f32 %v676_v60, %v675_v57 }
 0x318   : > { %v668_v2 = vadd.f32 %v667_v62, %v666_v59  ;;  %v678_v4 = vrot.slane %v677_v63, 2 }
 0x31a   : > { %v669_v5 = vrot.slane %v668_v2, 1  ;;  %v679_v6 = vadd.f32 %v678_v4, %v677_v63 }
 0x31c   : > { %v670_v8 = vadd.f32 %v669_v5, %v668_v2  ;;  %v680_v9 = vrot.slane %v679_v6, 1 }
 0x31e   : > { %v671_v10 = vmul.f32 %v670_v8, %v1511_v56  ;;  %v681_v12 = vadd.f32 %v680_v9, %v679_v6 }
 0x320   : > { %v683_v14 = vmul.f32 %v671_v10, %v671_v10  ;;  %v682_v15 = vmul.f32 %v681_v12, %v1511_v56  ;;  %v723_v56 = vld [vmem:[%s1770_s9 + $0x60] sm:$0xff]  ;;  %v685_v36 = vsub.f32 %v1583_v46, %v671_v10 }
 0x321   : > { %745 = vmatpush.msra.mxu3 %v723_v56 }
 0x322   : > { %v684_v18 = vsub.f32 %v682_v15, %v683_v14  ;;  %v1286_v15 = vmov 1  }
 0x323   : > { %746 = vmatpush.msra.mxu3 %v722_v22  ;;  %1193 = vset.pattern.permute.xlu0 %v1286_v15 }
 0x324   : > { %v686_v20 = vadd.f32 1e-05, %v684_v18 }
 0x325   : > { %747 = vmatpush.msra.mxu3 %v721_v23 }
 0x326   : > { %1204 = vrsqrt.f32 %v686_v20  ;;  %vm693_vm10 = vweird.f32 %v686_v20 }
 0x327   : > { %748 = vmatpush.msra.mxu3 %v720_v24  ;;  %1206 = vrcp.f32 %v1285_v21 }
 0x329   : > { %749 = vmatpush.msra.mxu3 %v719_v27 }
 0x32b   : > { %750 = vmatpush.msra.mxu3 %v718_v30 }
 0x32c   : > { %v1205_v25 = vpop.eup %1204 }
 0x32d   : > { %v688_v26 = vmul.f32 %v1205_v25, %v686_v20  ;;  %vm694_vm9 = vweird.f32 %v1205_v25  ;;  %751 = vmatpush.msra.mxu3 %v717_v28  ;;  %v1207_v61 = vpop.eup %1206 }
 0x32e   : > { %vm695_vm11 = vmor %vm693_vm10, %vm694_vm9  ;;  %v793_v62 = vmul.f32 16.0, %v1207_v61  ;;  %vm797_vm13 = vweird.f32 %v1207_v61 }
 0x32f   : > { %v689_v29 = vmul.f32 %v1205_v25, %v688_v26  ;;  %752 = vmatpush.msra.mxu3 %v716_v33 }
 0x330   : > { %v794_v63 = vsub.f32 1.0, %v793_v62 }
 0x331   : > { %v690_v31 = vmul.f32 0.5, %v689_v29  ;;  %753 = vmatpush.msra.mxu3 %v715_v35  ;;  %v826_v35 = vld [vmem:[%s1772_s11] sm:$0xff] }
 0x332   : > { %v795_v4 = vmul.f32 %v1207_v61, %v794_v63 }
 0x333   : > { %v691_v32 = vsub.f32 1.5, %v690_v31  ;;  %754 = vmatpush.msra.mxu3 %v714_v39 }
 0x334   : > { %v796_v12 = vadd.f32 %v1207_v61, %v795_v4 }
 0x335   : > { %v692_v34 = vmul.f32 %v1205_v25, %v691_v32  ;;  %755 = vmatpush.msra.mxu3 %v713_v42 }
 0x336   : > { %v798_v18 = vsel %vm797_vm13, %v1207_v61, %v796_v12  ;;  %vm1055_vm13 = vcmp.lt.s32.totalorder %v464_v0, 256 }
 0x337   : > { %v696_v37 = vsel %vm695_vm11, %v1205_v25, %v692_v34  ;;  %756 = vmatpush.msra.mxu3 %v712_v44 }
 0x338   : > { %v697_v40 = vmul.f32 %v696_v37, %v685_v36  ;;  %v828_v37 = vld [vmem:[%s1773_s12] sm:$0xff] }
 0x339   : > { %757 = vmatpush.msra.mxu3 %v711_v48 }
 0x33a   : > { %v699_v43 = vmul.f32 %v698_v38, %v697_v40 }
 0x33c   : > { %v701_v45 = vadd.f32 %v700_v41, %v699_v43 }
 0x33e   : > { %707 = vrot.lane.b32.xlu1 %v701_v45, %s1794_s26  ;;  %v704_v46 = vrot.slane %v701_v45, 1  ;;  %v702_v49 = vrot.slane %v701_v45, 7 }
 0x340   : > { %v705_v47 = vsel %vm1445_vm0, 0.0, %v704_v46  ;;  %v703_v51 = vsel %vm1471_vm1, 0.0, %v702_v49 }
 0x341   : > { %1141 = vmatmul.msk.f32.vlgmr.msrb.gmra.mxu2 %vm493_vm3, %v705_v47 }
 0x3b0   : > { %v708_v50 = vpop.permute.xlu1 %707 }
 0x3b1   : > { %v710_v52 = vsel %vm493_vm3, %v703_v51, %v708_v50 }
 0x3b2   : > { %758 = vmatmul.f32.vlgmr.msra.gmra.mxu3 %v710_v52 }
 0x3c4   : > { %v779_v55 = vpop.f32.mrf.mxu2 }
 0x435   : > { %v759_v53 = vpop.f32.mrf.mxu3 }
 0x436   : > { %v760_v54 = vadd.f32 %v1199_v11, %v759_v53 }
 0x438   : > { %v780_v57 = vadd.f32 %v779_v55, %v760_v54  ;;  %v1287_v55 = vmov 0  }
 0x439   : > { %1192 = vset.pattern.permute.xlu2 %v1287_v55 }
 0x43a   : > { %v783_v58 = vsel %vm782_vm12, %v780_v57, 0.0  ;;  %v800_v59 = vmul.f32 %v780_v57, %v780_v57 }
 0x43b   : > { %784 = vadd.xlane.f32.xlu1 %v783_v58 }
 0x43c   : > { %v801_v60 = vsel %vm782_vm12, %v800_v59, 0.0 }
 0x43d   : > { %802 = vadd.xlane.f32.xlu2 %v801_v60 }
 0x4ae   : > { %v785_v1 = vpop.xlane.xlu1 %784 }
 0x4af   : > { %v786_v2 = vrot.slane %v785_v1, 4 }
 0x4b0   : > { %v803_v5 = vpop.xlane.xlu2 %802 }
 0x4b1   : > { %v787_v6 = vadd.f32 %v786_v2, %v785_v1  ;;  %v804_v8 = vrot.slane %v803_v5, 4 }
 0x4b3   : > { %v788_v9 = vrot.slane %v787_v6, 2  ;;  %v805_v10 = vadd.f32 %v804_v8, %v803_v5 }
 0x4b5   : > { %v789_v13 = vadd.f32 %v788_v9, %v787_v6  ;;  %v806_v14 = vrot.slane %v805_v10, 2 }
 0x4b7   : > { %v790_v16 = vrot.slane %v789_v13, 1  ;;  %v807_v17 = vadd.f32 %v806_v14, %v805_v10 }
 0x4b9   : > { %v791_v19 = vadd.f32 %v790_v16, %v789_v13  ;;  %v808_v20 = vrot.slane %v807_v17, 1 }
 0x4bb   : > { %v799_v56 = vmul.f32 %v798_v18, %v791_v19  ;;  %v809_v22 = vadd.f32 %v808_v20, %v807_v17 }
 0x4bd   : > { %v811_v23 = vmul.f32 %v799_v56, %v799_v56  ;;  %v810_v24 = vmul.f32 %v809_v22, %v798_v18  ;;  %v813_v33 = vsub.f32 %v780_v57, %v799_v56  ;;  %v882_v22 = vld [vmem:[%s1774_s13] sm:$0xff] }
 0x4bf   : > { %v812_v25 = vsub.f32 %v810_v24, %v811_v23 }
 0x4c1   : > { %v814_v26 = vadd.f32 1e-05, %v812_v25 }
 0x4c3   : > { %1208 = vrsqrt.f32 %v814_v26  ;;  %vm821_vm15 = vweird.f32 %v814_v26 }
 0x4c9   : > { %v1209_v27 = vpop.eup %1208 }
 0x4ca   : > { %v816_v29 = vmul.f32 %v1209_v27, %v814_v26  ;;  %vm822_vm14 = vweird.f32 %v1209_v27 }
 0x4cb   : > { %vm823_vm0 = vmor %vm821_vm15, %vm822_vm14 }
 0x4cc   : > { %v817_v30 = vmul.f32 %v1209_v27, %v816_v29 }
 0x4ce   : > { %v818_v31 = vmul.f32 0.5, %v817_v30 }
 0x4d0   : > { %v819_v28 = vsub.f32 1.5, %v818_v31 }
 0x4d2   : > { %v820_v32 = vmul.f32 %v1209_v27, %v819_v28 }
 0x4d4   : > { %v824_v34 = vsel %vm823_vm0, %v1209_v27, %v820_v32 }
 0x4d5   : > { %v825_v36 = vmul.f32 %v824_v34, %v813_v33 }
 0x4d7   : > { %v827_v38 = vmul.f32 %v826_v35, %v825_v36 }
 0x4d9   : > { %v829_v39 = vadd.f32 %v828_v37, %v827_v38 }
 0x4db   : > { %v830_v40 = vsel %vm782_vm12, %v829_v39, -inf }
 0x4dc   : > { %v831_v41 = vrot.slane %v830_v40, 4 }
 0x4de   : > { %v832_v42 = vmax.f32 %v830_v40, %v831_v41 }
 0x4e0   : > { %v833_v43 = vrot.slane %v832_v42, 2 }
 0x4e2   : > { %v834_v44 = vmax.f32 %v832_v42, %v833_v43 }
 0x4e4   : > { %v835_v45 = vrot.slane %v834_v44, 1 }
 0x4e6   : > { %v836_v46 = vmax.f32 %v834_v44, %v835_v45 }
 0x4e8   : > { %v837_v47 = vsub.f32 %v829_v39, %v836_v46 }
 0x4ea   : > { %v838_v48 = vmul.f32 1.442695, %v837_v47 }
 0x4ec   : > { %1210 = vpow2.f32 %v838_v48 }
 0x4f2   : > { %v1211_v49 = vpop.eup %1210 }
 0x4f3   : > { %v840_v50 = vsel %vm782_vm12, %v1211_v49, 0.0  ;;  %vm1050_vm12 = vcmask 1040384  }
 0x4f4   : > { %v841_v51 = vrot.slane %v840_v50, 4 }
 0x4f6   : > { %v842_v52 = vadd.f32 %v841_v51, %v840_v50 }
 0x4f8   : > { %v843_v11 = vrot.slane %v842_v52, 2 }
 0x4fa   : > { %v844_v53 = vadd.f32 %v843_v11, %v842_v52 }
 0x4fc   : > { %v845_v54 = vrot.slane %v844_v53, 1 }
 0x4fe   : > { %v846_v57 = vadd.f32 %v845_v54, %v844_v53 }
 0x500   : > { %1212 = vrcp.f32 %v846_v57  ;;  %v858_v21 = vand.u32 2147483648, %v846_v57  ;;  %v856_v62 = vand.u32 2147483647, %v846_v57  ;;  %vm852_vm5 = vweird.f32 %v846_v57 }
 0x502   : > { %v859_v1 = vor.u32 1.1754944e-38, %v858_v21  ;;  %vm857_vm7 = vcmp.eq.f32.partialorder %v856_v62, 8.507059e+37 }
 0x506   : > { %v1213_v58 = vpop.eup %1212 }
 0x507   : > { %v848_v59 = vmul.f32 %v1213_v58, %v846_v57  ;;  %vm853_vm1 = vweird.f32 %v1213_v58 }
 0x508   : > { %vm854_vm6 = vmor %vm852_vm5, %vm853_vm1 }
 0x509   : > { %v849_v60 = vsub.f32 1.0, %v848_v59 }
 0x50b   : > { %v850_v61 = vmul.f32 %v1213_v58, %v849_v60 }
 0x50d   : > { %v851_v63 = vadd.f32 %v1213_v58, %v850_v61 }
 0x50f   : > { %v855_v2 = vsel %vm854_vm6, %v1213_v58, %v851_v63 }
 0x510   : > { %v860_v4 = vsel %vm857_vm7, %v859_v1, %v855_v2 }
 0x511   : > { %v862_v5 = vmul.f32 %v1211_v49, %v860_v4 }
 0x513   : > { %893 = vperm.xlu0 %1193, %v862_v5   ;;  %v863_v6 = vmul.f32 0.8, %v862_v5 }
 0x515   : > { %v864_v8 = vmul.f32 2.0, %v863_v6 }
 0x517   : > { %v865_v9 = vmul.f32 %v864_v8, %v863_v6 }
 0x519   : > { %v866_v10 = vadd.f32 1e-05, %v865_v9 }
 0x51b   : > { %1214 = vrcp.f32 %v866_v10  ;;  %1196 = vset.pattern.permute.xlu0 %v1421_v3  ;;  %v878_v15 = vand.u32 2147483648, %v866_v10  ;;  %v876_v17 = vand.u32 2147483647, %v866_v10  ;;  %vm872_vm9 = vweird.f32 %v866_v10 }
 0x51d   : > { %v879_v19 = vor.u32 1.1754944e-38, %v878_v15  ;;  %vm877_vm11 = vcmp.eq.f32.partialorder %v876_v17, 8.507059e+37 }
 0x521   : > { %v1215_v12 = vpop.eup %1214 }
 0x522   : > { %v868_v13 = vmul.f32 %v1215_v12, %v866_v10  ;;  %vm873_vm8 = vweird.f32 %v1215_v12 }
 0x523   : > { %vm874_vm10 = vmor %vm872_vm9, %vm873_vm8 }
 0x524   : > { %v869_v14 = vsub.f32 1.0, %v868_v13 }
 0x526   : > { %v870_v16 = vmul.f32 %v1215_v12, %v869_v14 }
 0x528   : > { %v871_v18 = vadd.f32 %v1215_v12, %v870_v16 }
 0x52a   : > { %v875_v20 = vsel %vm874_vm10, %v1215_v12, %v871_v18 }
 0x52b   : > { %v880_v56 = vsel %vm877_vm11, %v879_v19, %v875_v20 }
 0x52c   : > { %885 = vperm.xlu2 %1192, %v880_v56  }
 0x534   : > { %1194 = vset.pattern.permute.xlu2 %v1421_v3 }
 0x585   : > { %v894_v34 = vpop.permute.xlu0 %893 }
 0x586   : > { %v886_v23 = vpop.permute.xlu2 %885  ;;  %v1697_v35 = vmul.f32 %v894_v34, %v1434_v7 }
 0x587   : > { %v888_v24 = vmul.f32 %v886_v23, %v882_v22 }
 0x589   : > { %v889_v25 = vmul.f32 1.442695, %v888_v24 }
 0x58b   : > { %1216 = vpow2.f32 %v889_v25 }
 0x591   : > { %v1217_v26 = vpop.eup %1216 }
 0x592   : > { %v987_v27 = vperm.slane %v1217_v26, 6  ;;  %v972_v29 = vperm.slane %v1217_v26, 5  ;;  %v927_v30 = vperm.slane %v1217_v26, 2  ;;  %v957_v31 = vperm.slane %v1217_v26, 4 }
 0x593   : > { %v912_v28 = vperm.slane %v1217_v26, 1  ;;  %v1002_v3 = vperm.slane %v1217_v26, 7  ;;  %v942_v32 = vperm.slane %v1217_v26, 3  ;;  %v897_v33 = vperm.slane %v1217_v26, 0 }
 0x594   : > { %992 = vperm.xlu1 %1195, %v987_v27   ;;  %977 = vperm.xlu2 %1194, %v972_v29  }
 0x595   : > { %932 = vperm.xlu0 %1196, %v927_v30  }
 0x59c   : > { %962 = vperm.xlu1 %1195, %v957_v31   ;;  %917 = vperm.xlu2 %1194, %v912_v28  }
 0x5a4   : > { %1007 = vperm.xlu2 %1194, %v1002_v3  }
 0x5ac   : > { %947 = vperm.xlu2 %1194, %v942_v32  }
 0x5b4   : > { %902 = vperm.xlu2 %1194, %v897_v33  }
 0x5ee   : > { %v978_v36 = vpop.permute.xlu2 %977 }
 0x5ef   : > { %v979_v37 = vmul.f32 %v978_v36, %v1697_v35 }
 0x5f1   : > { %v980_v38 = vsel %vm491_vm2, %v979_v37, 0.0 }
 0x5f2   : > { %v981_v39 = vrot.slane %v980_v38, 4 }
 0x5f4   : > { %v982_v40 = vadd.f32 %v981_v39, %v980_v38 }
 0x5f6   : > { %v983_v41 = vrot.slane %v982_v40, 2  ;;  %v918_v42 = vpop.permute.xlu2 %917 }
 0x5f7   : > { %v919_v43 = vmul.f32 %v918_v42, %v1697_v35 }
 0x5f8   : > { %v984_v44 = vadd.f32 %v983_v41, %v982_v40 }
 0x5f9   : > { %v920_v45 = vsel %vm491_vm2, %v919_v43, 0.0 }
 0x5fa   : > { %v921_v46 = vrot.slane %v920_v45, 4  ;;  %v985_v47 = vrot.slane %v984_v44, 1 }
 0x5fc   : > { %v922_v48 = vadd.f32 %v921_v46, %v920_v45  ;;  %v986_v49 = vadd.f32 %v985_v47, %v984_v44 }
 0x5fe   : > { %v923_v7 = vrot.slane %v922_v48, 2  ;;  %1030 = vrot.lane.b32.xlu0 %v986_v49, %s1795_s25  ;;  %v1008_v50 = vpop.permute.xlu2 %1007 }
 0x5ff   : > { %v1009_v51 = vmul.f32 %v1008_v50, %v1697_v35 }
 0x600   : > { %v924_v52 = vadd.f32 %v923_v7, %v922_v48 }
 0x601   : > { %v1010_v11 = vsel %vm491_vm2, %v1009_v51, 0.0 }
 0x602   : > { %v1011_v53 = vrot.slane %v1010_v11, 4  ;;  %v925_v54 = vrot.slane %v924_v52, 1 }
 0x604   : > { %v1012_v55 = vadd.f32 %v1011_v53, %v1010_v11  ;;  %v926_v57 = vadd.f32 %v925_v54, %v924_v52 }
 0x606   : > { %v1013_v58 = vrot.slane %v1012_v55, 2  ;;  %v993_v59 = vpop.permute.xlu1 %992  ;;  %v948_v60 = vpop.permute.xlu2 %947  ;;  %1018 = vrot.lane.b32.xlu2 %v926_v57, %s1795_s25  ;;  %s1232_s25 = sshra.s32 %s1074_s18, 4  ;;  %s1233_s25 = int_to_ptr.hbm [resolvable:$true] %s1232_s25 }
 0x607   : > { %v994_v21 = vmul.f32 %v993_v59, %v1697_v35  ;;  %v933_v61 = vpop.permute.xlu0 %932  ;;  %v949_v62 = vmul.f32 %v948_v60, %v1697_v35  ;;  %p1239_p0 = scmp.lt.s32.totalorder %s1233_s25, %s1775_s14 }
 0x608   : > { %v1014_v63 = vadd.f32 %v1013_v58, %v1012_v55  ;;  %v934_v1 = vmul.f32 %v933_v61, %v1697_v35 }
 0x609   : > { %v995_v2 = vsel %vm491_vm2, %v994_v21, 0.0  ;;  %v950_v4 = vsel %vm491_vm2, %v949_v62, 0.0 }
 0x60a   : > { %v996_v5 = vrot.slane %v995_v2, 4  ;;  %v935_v6 = vsel %vm491_vm2, %v934_v1, 0.0  ;;  %v951_v8 = vrot.slane %v950_v4, 4  ;;  %v1015_v9 = vrot.slane %v1014_v63, 1 }
 0x60b   : > { %v936_v10 = vrot.slane %v935_v6, 4 }
 0x60c   : > { %v997_v12 = vadd.f32 %v996_v5, %v995_v2  ;;  %v952_v13 = vadd.f32 %v951_v8, %v950_v4  ;;  %v1016_v14 = vadd.f32 %v1015_v9, %v1014_v63 }
 0x60d   : > { %v937_v15 = vadd.f32 %v936_v10, %v935_v6 }
 0x60e   : > { %v998_v16 = vrot.slane %v997_v12, 2  ;;  %v953_v17 = vrot.slane %v952_v13, 2  ;;  %1038 = vrot.lane.b32.xlu0 %v1016_v14, %s1288_s27  ;;  %v963_v29 = vpop.permute.xlu1 %962  ;;  %v903_v31 = vpop.permute.xlu2 %902 }
 0x60f   : > { %v938_v19 = vrot.slane %v937_v15, 2  ;;  %v964_v30 = vmul.f32 %v963_v29, %v1697_v35  ;;  %v904_v3 = vmul.f32 %v903_v31, %v1697_v35 }
 0x610   : > { %v999_v18 = vadd.f32 %v998_v16, %v997_v12  ;;  %v954_v20 = vadd.f32 %v953_v17, %v952_v13 }
 0x611   : > { %v939_v23 = vadd.f32 %v938_v19, %v937_v15  ;;  %v965_v28 = vsel %vm491_vm2, %v964_v30, 0.0  ;;  %v905_v33 = vsel %vm491_vm2, %v904_v3, 0.0 }
 0x612   : > { %v1000_v56 = vrot.slane %v999_v18, 1  ;;  %v955_v22 = vrot.slane %v954_v20, 1  ;;  %v966_v32 = vrot.slane %v965_v28, 4  ;;  %v906_v36 = vrot.slane %v905_v33, 4 }
 0x613   : > { %v940_v26 = vrot.slane %v939_v23, 1 }
 0x614   : > { %v1001_v24 = vadd.f32 %v1000_v56, %v999_v18  ;;  %v956_v25 = vadd.f32 %v955_v22, %v954_v20  ;;  %v967_v34 = vadd.f32 %v966_v32, %v965_v28  ;;  %v907_v38 = vadd.f32 %v906_v36, %v905_v33 }
 0x615   : > { %v941_v27 = vadd.f32 %v940_v26, %v939_v23 }
 0x616   : > { %1034 = vrot.lane.b32.xlu1 %v1001_v24, %s1794_s26  ;;  %1026 = vrot.lane.b32.xlu2 %v956_v25, %s1288_s27  ;;  %v968_v37 = vrot.slane %v967_v34, 2  ;;  %v908_v40 = vrot.slane %v907_v38, 2  ;;  %s1234_s27 = scalar_lea.hbm %s1233_s25, 2 }
 0x617   : > { %p1235_p11 = scmp.ne.s32.totalorder %s1233_s25, %s1234_s27  ;;  %p1240_p1 = scmp.lt.s32.totalorder %s1238_s20, %s1234_s27 }
 0x618   : > { %v969_v39 = vadd.f32 %v968_v37, %v967_v34  ;;  %v909_v43 = vadd.f32 %v908_v40, %v907_v38 }
 0x619   : > { %p1236_p12 = pnand %p1235_p11, %p1402_p5  ;;  %p1241_p2 = por %p1240_p1, %p1239_p0 }
 0x61a   : > { %v970_v41 = vrot.slane %v969_v39, 1  ;;  %v910_v35 = vrot.slane %v909_v43, 1 }
 0x61b   : > { %p1237_p13 = pneg %p1236_p12 }
 0x61c   : > { %v971_v44 = vadd.f32 %v970_v41, %v969_v39  ;;  %v911_v7 = vadd.f32 %v910_v35, %v909_v43 }
 0x61d   : > { %p1242_p3 = pnand %p1241_p2, %p1237_p13 }
 0x61e   : > { %1022 = vrot.lane.b32.xlu1 %v941_v27, %s1794_s26  ;;  %s456_s26 = sand.u32 1, %s1272_s30  }
 0x61f   : > { %s1137_s0 = sshll.u32 %s456_s26, 1  ;;  %s1059_s17 = scalar_lea.sflag [#allocation3], %s456_s26 }
 0x620   : > { %s458_s22 = scalar_lea.vmem [#allocation2], %s1137_s0 }
 0x621   : > { %s1727_s21 = sshll.u32 %s458_s22, 4  ;;  %s1072_s21 = int_to_ptr.vmem [resolvable:$true] %s1727_s21 }
 0x660   : > { %v1019_v46 = vpop.permute.xlu2 %1018 }
 0x661   : > { %v1041_v51 = vsel %vm491_vm2, %v911_v7, %v1019_v46 }
 0x670   : > { %v1031_v42 = vpop.permute.xlu0 %1030  ;;  %v1027_v11 = vpop.permute.xlu2 %1026 }
 0x671   : > { %v1044_v47 = vsel %vm491_vm2, %v971_v44, %v1031_v42 }
 0x680   : > { %v1039_v49 = vpop.permute.xlu0 %1038 }
 0x688   : > { %v1035_v45 = vpop.permute.xlu1 %1034 }
 0x689   : > { %v1045_v48 = vsel %vm493_vm3, %v1044_v47, %v1035_v45 }
 0x68a   : > { %v1046_v50 = vsel %vm511_vm4, %v1045_v48, %v1039_v49 }
 0x68b   : > { %v1049_v53 = vrot.slane %v1046_v50, 7 }
 0x690   : > { %v1023_v52 = vpop.permute.xlu1 %1022 }
 0x691   : > { %v1042_v54 = vsel %vm493_vm3, %v1041_v51, %v1023_v52 }
 0x692   : > { %v1043_v55 = vsel %vm511_vm4, %v1042_v54, %v1027_v11 }
 0x693   : > { %v1051_v57 = vsel %vm1050_vm12, %v1043_v55, %v1049_v53 }
 0x694   : > { %1057 = vst.msk [vmem:[%s458_s22] sm:$0x3] %vm1055_vm13, %v1051_v57 }
 0x695   : > { %1245 = shalt.err (!%p1242_p3)
}
 0x696   : > { %1146 = dma.vmem_to_hbm [thread:$0]  (%p1402_p5), %s1072_s21, 32, %s1074_s18, %s1059_s17  }
 0x697 PF: > { %p1152_p4 = scmp.ge.s32.totalorder %s1280_s16, 2  ;;  %s1085_s26 = sand.u32 1, %s1268_s29  }
 0x698   : > { %s1086_s22 = scalar_lea.sflag [#allocation3], %s1085_s26 }
 0x699   : > { %p1149_p7 = pnand %p1152_p4, %p1406_p6 }
 0x69b   : > { %p1150_p8 = pneg %p1149_p7 }
 0x69d   : > { %1263 = dma.done.wait (%p1150_p8), %s1086_s22, 32  }
 0x69e   : > { %1265 = vsyncadd (%p1150_p8), %s1086_s22, 4294967264  ;;  %s1796_s16 = sld [smem:[#allocation6_spill]]  ;;  %s1799_s29 = smov %s1272_s30 }
 0x69f   : > { %s1797_s25 = sld [smem:[#allocation5_spill]] }
 0x6a0   : > { %s1798_s15 = sld [smem:[#allocation7_spill]] }
 0x6a4   : > { %p24_p9 = scmp.ge.s32.totalorder %s1796_s16, 4  }
 0x6a5   : > { %s1800_s30 = smov %s1797_s25 }
 0x6a6   :  { %26 = sbr.rel (!%p24_p9) target bundleno = 5 (0x5), region = 111 }
 0x6ab   :  { %1092 = vsyncpa [#allocation3], 1 }
 0x6ac   :  { %1094 = vsyncpa [#allocation3 + $0x1], 1 }

</bundles_post_ra>
